<compile_context>
chip_gen: v5e
topology: v5e:2x2
jax: 0.10.0
libtpu: 0.0.40
codegen_flags: <defaults>
</compile_context>

<pallas_src>
import functools

import jax
import jax.numpy as jnp
from jax.experimental import pallas as pl
from jax.experimental.pallas import tpu as pltpu

_VMEM = pl.BlockSpec(memory_space=pltpu.MemorySpace.VMEM)
_LAYER_STRIDES = (1, 2, 2, 2)  # resnet50 layer strides (kept static / out of the param pytree)


# ------------------------------------------------------------------------------ kernels

def _matmul_bn_kernel(a_ref, b_ref, scale_ref, shift_ref, *rest, relu, has_res):
    """out = act((A @ B) * scale + shift [+ residual]); K-reduction over grid axis 2."""
    if has_res:
        res_ref, o_ref, acc_ref = rest
    else:
        o_ref, acc_ref = rest

    @pl.when(pl.program_id(2) == 0)
    def _():
        acc_ref[...] = jnp.zeros_like(acc_ref)

    acc_ref[...] += jnp.dot(a_ref[...], b_ref[...], preferred_element_type=jnp.float32)

    @pl.when(pl.program_id(2) == pl.num_programs(2) - 1)
    def _():
        y = acc_ref[...] * scale_ref[...] + shift_ref[...]
        if has_res:
            y = y + res_ref[...].astype(jnp.float32)
        if relu:
            y = jnp.maximum(y, 0.0)
        o_ref[...] = y.astype(o_ref.dtype)


def _conv_tap_kernel(x_ref, w_ref, scale_ref, shift_ref, o_ref, *,
                     kh_size, kw_size, stride, hq, out_w, relu):
    """KxK conv (K>1) + folded BN (+ReLU) without HBM im2col.

    x_ref:  [1, s*s*HQ, WQ, Cin]  phase-split padded image (resident across rows)
    w_ref:  [KH*KW, Cin, Cout]    weights (resident)
    o_ref:  [1, 1, OW, Cout]      one output row per grid step
    """
    oh = pl.program_id(1)
    s = stride
    cin = x_ref.shape[-1]
    cout = o_ref.shape[-1]
    acc = jnp.zeros((out_w, cout), jnp.float32)
    for t in range(kh_size * kw_size):
        kh, kw = t // kw_size, t % kw_size
        row = ((kh % s) * s + (kw % s)) * hq + kh // s           # static offset per tap
        a = x_ref[0, oh + row, pl.ds(kw // s, out_w), :]         # [OW, Cin]
        if cin == 1:
            # 1-channel stem: VPU broadcast multiply beats a K=1 MXU matmul.
            acc = acc + a.astype(jnp.float32) * w_ref[t].astype(jnp.float32)
        else:
            acc = acc + jnp.dot(a, w_ref[t], preferred_element_type=jnp.float32)
    y = acc * scale_ref[...] + shift_ref[...]
    if relu:
        y = jnp.maximum(y, 0.0)
    o_ref[0, 0, :, :] = y.astype(o_ref.dtype)


def _maxpool_tap_kernel(x_ref, o_ref, *, k_size, stride, hq, out_w):
    """3x3/2 max-pool via the same phase-split tap loop (no 9x HBM blowup)."""
    oh = pl.program_id(1)
    s = stride
    acc = None
    for t in range(k_size * k_size):
        kh, kw = t // k_size, t % k_size
        row = ((kh % s) * s + (kw % s)) * hq + kh // s
        v = x_ref[0, oh + row, pl.ds(kw // s, out_w), :]
        acc = v if acc is None else jnp.maximum(acc, v)
    o_ref[0, 0, :, :] = acc


def _global_avgpool_kernel(x_ref, o_ref, *, inv_hw):
    # x_ref: [N, HW, C] (bf16) -> mean over HW via an XLU reduce, accumulate in f32.
    o_ref[...] = jnp.sum(x_ref[...].astype(jnp.float32), axis=1) * inv_hw


def _head_kernel(img_ref, clin_ref, w1_ref, b1_ref, w2_ref, b2_ref,
                 wf_i_ref, wf_c_ref, bf_ref, wc_ref, bc_ref, o_ref):
    """Fused clinical MLP + concat + fusion + classifier.
    concat([img, clin]) @ Wf == img @ Wf[:2048] + clin @ Wf[2048:]  (no in-kernel concat)."""
    h = jnp.dot(clin_ref[...], w1_ref[...], preferred_element_type=jnp.float32) + b1_ref[...]
    h = jnp.maximum(h, 0.0)
    c = jnp.dot(h, w2_ref[...], preferred_element_type=jnp.float32) + b2_ref[...]
    f = (jnp.dot(img_ref[...], wf_i_ref[...], preferred_element_type=jnp.float32)
         + jnp.dot(c, wf_c_ref[...], preferred_element_type=jnp.float32)
         + bf_ref[...])
    o_ref[...] = jnp.dot(f, wc_ref[...], preferred_element_type=jnp.float32) + bc_ref[...]


# ------------------------------------------------------------------------------ wrappers

def _pick_tile(dim, candidates):
    for c in candidates:
        if dim % c == 0:
            return c
    return dim


def matmul_bn(a, b, scale, shift, *, relu, residual=None, out_dtype=jnp.bfloat16):
    """act((a @ b) * scale + shift [+ residual]) -- grid-tiled bf16 MXU matmul,
    f32 VMEM accumulator, fused BN / ReLU / residual epilogue."""
    m, k = a.shape
    k2, n = b.shape
    assert k == k2
    # Keep M sublane-friendly (>= multiple of 8); pad rows and slice them back off.
    m_pad = max(8, ((m + 7) // 8) * 8)
    if m_pad != m:
        a = jnp.pad(a, ((0, m_pad - m), (0, 0)))
        if residual is not None:
            residual = jnp.pad(residual, ((0, m_pad - m), (0, 0)))
    a = a.astype(jnp.bfloat16)
    b = b.astype(jnp.bfloat16)
    scale = scale.reshape(1, n).astype(jnp.float32)
    shift = shift.reshape(1, n).astype(jnp.float32)

    tm = _pick_tile(m_pad, (256, 128))
    tn = _pick_tile(n, (512, 256, 128))
    tk = _pick_tile(k, (512, 256, 128))
    grid = (m_pad // tm, n // tn, k // tk)

    in_specs = [
        pl.BlockSpec((tm, tk), lambda i, j, kk: (i, kk)),
        pl.BlockSpec((tk, tn), lambda i, j, kk: (kk, j)),
        pl.BlockSpec((1, tn), lambda i, j, kk: (0, j)),
        pl.BlockSpec((1, tn), lambda i, j, kk: (0, j)),
    ]
    args = [a, b, scale, shift]
    if residual is not None:
        in_specs.append(pl.BlockSpec((tm, tn), lambda i, j, kk: (i, j)))
        args.append(residual)

    bytes_accessed = a.size * 2 + b.size * 2 + m_pad * n * 2
    if residual is not None:
        bytes_accessed += residual.size * residual.dtype.itemsize

    out = pl.pallas_call(
        functools.partial(_matmul_bn_kernel, relu=relu, has_res=residual is not None),
        out_shape=jax.ShapeDtypeStruct((m_pad, n), out_dtype),
        grid=grid,
        in_specs=in_specs,
        out_specs=pl.BlockSpec((tm, tn), lambda i, j, kk: (i, j)),
        scratch_shapes=[pltpu.VMEM((tm, tn), jnp.float32)],
        compiler_params=pltpu.CompilerParams(
            dimension_semantics=("parallel", "parallel", "arbitrary")),
        cost_estimate=pl.CostEstimate(flops=2 * m_pad * n * k,
                                      transcendentals=0,
                                      bytes_accessed=int(bytes_accessed)),
    )(*args)
    return out[:m] if m_pad != m else out


def _make_phases(x, pad, stride, pad_value=0.0):
    """Pad NHWC spatially and split H/W into `stride` phases so every conv/pool tap
    becomes a unit-stride slice in the kernel.  Returns [N, s*s*HQ, WQ, C]."""
    n, h, w, c = x.shape
    hp, wp = h + 2 * pad, w + 2 * pad
    s = stride
    hq, wq = (hp + s - 1) // s, (wp + s - 1) // s
    xp = jnp.pad(x, ((0, 0), (pad, pad + hq * s - hp), (pad, pad + wq * s - wp), (0, 0)),
                 constant_values=pad_value)
    phases = (xp.reshape(n, hq, s, wq, s, c)
                .transpose(0, 2, 4, 1, 3, 5)
                .reshape(n, s * s * hq, wq, c))
    return phases, hp, wp, hq, wq


def conv_tap_bn(x, w, scale, shift, *, stride, pad, relu):
    """KxK conv (K>1) + folded BN (+ReLU), no HBM im2col: grid = (image, output row)."""
    n, h, w_in, cin = x.shape
    kh, kw, _, cout = w.shape
    s = stride
    phases, hp, wp, hq, wq = _make_phases(x.astype(jnp.bfloat16), pad, s, pad_value=0.0)
    oh = (hp - kh) // s + 1
    ow = (wp - kw) // s + 1
    w2 = w.reshape(kh * kw, cin, cout).astype(jnp.bfloat16)
    return pl.pallas_call(
        functools.partial(_conv_tap_kernel, kh_size=kh, kw_size=kw, stride=s,
                          hq=hq, out_w=ow, relu=relu),
        out_shape=jax.ShapeDtypeStruct((n, oh, ow, cout), jnp.bfloat16),
        grid=(n, oh),
        in_specs=[
            pl.BlockSpec((1, s * s * hq, wq, cin), lambda i, j: (i, 0, 0, 0)),
            pl.BlockSpec((kh * kw, cin, cout), lambda i, j: (0, 0, 0)),
            pl.BlockSpec((1, cout), lambda i, j: (0, 0)),
            pl.BlockSpec((1, cout), lambda i, j: (0, 0)),
        ],
        out_specs=pl.BlockSpec((1, 1, ow, cout), lambda i, j: (i, j, 0, 0)),
        compiler_params=pltpu.CompilerParams(
            dimension_semantics=("parallel", "parallel")),
        cost_estimate=pl.CostEstimate(
            flops=2 * n * oh * ow * kh * kw * cin * cout,
            transcendentals=0,
            bytes_accessed=int(phases.size * 2 + w2.size * 2 + n * oh * ow * cout * 2)),
    )(phases, w2, scale.reshape(1, cout).astype(jnp.float32),
      shift.reshape(1, cout).astype(jnp.float32))


def maxpool2d(x, *, k=3, stride=2, pad=1):
    n, h, w, c = x.shape
    phases, hp, wp, hq, wq = _make_phases(x, pad, stride, pad_value=-jnp.inf)
    oh = (hp - k) // stride + 1
    ow = (wp - k) // stride + 1
    return pl.pallas_call(
        functools.partial(_maxpool_tap_kernel, k_size=k, stride=stride, hq=hq, out_w=ow),
        out_shape=jax.ShapeDtypeStruct((n, oh, ow, c), x.dtype),
        grid=(n, oh),
        in_specs=[pl.BlockSpec((1, stride * stride * hq, wq, c),
                               lambda i, j: (i, 0, 0, 0))],
        out_specs=pl.BlockSpec((1, 1, ow, c), lambda i, j: (i, j, 0, 0)),
        compiler_params=pltpu.CompilerParams(
            dimension_semantics=("parallel", "parallel")),
    )(phases)


def global_avgpool(x):
    n, h, w, c = x.shape
    xr = x.reshape(n, h * w, c)
    return pl.pallas_call(
        functools.partial(_global_avgpool_kernel, inv_hw=1.0 / float(h * w)),
        out_shape=jax.ShapeDtypeStruct((n, c), jnp.float32),
        in_specs=[_VMEM],
        out_specs=_VMEM,
    )(xr)


def fusion_head(img_feat, x_clin, params):
    """Clinical branch (Linear->ReLU->Linear) + concat + fusion Linear + classifier,
    fused into one Pallas call (weights all fit VMEM)."""
    m = img_feat.shape[0]
    m_pad = max(8, ((m + 7) // 8) * 8)
    img = jnp.pad(img_feat.astype(jnp.float32), ((0, m_pad - m), (0, 0)))
    clin = jnp.pad(x_clin.astype(jnp.float32), ((0, m_pad - m), (0, 0)))
    d_img = img.shape[1]
    wf_i = params['fusion_w'][:d_img]
    wf_c = params['fusion_w'][d_img:]
    args = (img, clin,
            params['clin_w1'], params['clin_b1'].reshape(1, -1),
            params['clin_w2'], params['clin_b2'].reshape(1, -1),
            wf_i, wf_c, params['fusion_b'].reshape(1, -1),
            params['cls_w'], params['cls_b'].reshape(1, -1))
    out = pl.pallas_call(
        _head_kernel,
        out_shape=jax.ShapeDtypeStruct((m_pad, params['cls_w'].shape[1]), jnp.float32),
        in_specs=[_VMEM] * len(args),
        out_specs=_VMEM,
    )(*args)
    return out[:m]


# ------------------------------------------------------------------------------ model

def bottleneck(x, p, stride):
    n, h, w, cin = x.shape
    m = n * h * w
    # conv1: 1x1 + BN + ReLU  (pure matmul, no im2col)
    out = matmul_bn(x.reshape(m, cin), p['w1'].reshape(cin, -1), p['s1'], p['t1'], relu=True)
    c_mid = out.shape[1]
    # conv2: 3x3 (stride s) + BN + ReLU  (tap-loop conv, no HBM im2col)
    out = conv_tap_bn(out.reshape(n, h, w, c_mid), p['w2'], p['s2'], p['t2'],
                      stride=stride, pad=1, relu=True)
    n2, oh, ow, _ = out.shape
    mo = n2 * oh * ow
    # identity / downsample
    if 'wd' in p:
        xs = x[:, ::stride, ::stride, :] if stride > 1 else x
        identity = matmul_bn(xs.reshape(mo, cin), p['wd'].reshape(cin, -1),
                             p['sd'], p['td'], relu=False)
    else:
        identity = x.reshape(mo, cin)
    # conv3: 1x1 + BN, residual add + ReLU fused into the matmul epilogue
    c4 = p['w3'].shape[-1]
    y = matmul_bn(out.reshape(mo, c_mid), p['w3'].reshape(c_mid, c4),
                  p['s3'], p['t3'], relu=True, residual=identity)
    return y.reshape(n2, oh, ow, c4)


def resnet_forward(params, x_image, x_clinical):
    # x_image: NCHW (PyTorch, 1 channel); x_clinical: [N, clinical_input_dim]
    x = jnp.transpose(x_image, (0, 2, 3, 1)).astype(jnp.bfloat16)      # NHWC, bf16 activations
    # stem: 7x7/2 conv (Cin=1) + BN + ReLU, then 3x3/2 max-pool
    x = conv_tap_bn(x, params['stem_w'], params['stem_s'], params['stem_t'],
                    stride=2, pad=3, relu=True)
    x = maxpool2d(x, k=3, stride=2, pad=1)
    for li, layer in enumerate(params['layers']):
        for bi, blk in enumerate(layer):
            x = bottleneck(x, blk, stride=_LAYER_STRIDES[li] if bi == 0 else 1)
    image_features = global_avgpool(x)                                  # [N, 2048] (encoder.fc = Identity)
    return fusion_head(image_features, x_clinical, params)


def init_params(seed=0, num_classes=2, clinical_input_dim=4, fusion_dim=256):
    eps = 1e-5
    inv = 1.0 / float(jnp.sqrt(1.0 + eps))  # BN running_var = 1, running_mean = 0

    key = jax.random.PRNGKey(seed)

    def nk():
        nonlocal key
        key, sub = jax.random.split(key)
        return sub

    def conv_w(k, kh, kw, cin, cout):                        # kaiming-normal (fan_in)
        std = (2.0 / (kh * kw * cin)) ** 0.5
        return jax.random.normal(k, (kh, kw, cin, cout), jnp.float32) * std

    def bn(cout, gamma=1.0):
        return (jnp.full((cout,), gamma * inv, jnp.float32),
                jnp.zeros((cout,), jnp.float32))

    def linear(k, fin, fout):                                # PyTorch Linear default init
        bound = 1.0 / (fin ** 0.5)
        kw_, kb_ = jax.random.split(k)
        w = jax.random.uniform(kw_, (fin, fout), jnp.float32, -bound, bound)
        b = jax.random.uniform(kb_, (fout,), jnp.float32, -bound, bound)
        return w, b

    params = {}
    params['stem_w'] = conv_w(nk(), 7, 7, 1, 64)             # conv1 replaced: 1 input channel
    params['stem_s'], params['stem_t'] = bn(64)

    layers_cfg = [(64, 3), (128, 4), (256, 6), (512, 3)]     # resnet50
    in_ch = 64
    layers = []
    for li, (planes, nblocks) in enumerate(layers_cfg):
        stride = _LAYER_STRIDES[li]
        blocks = []
        for bi in range(nblocks):
            s = stride if bi == 0 else 1
            blk = {}
            blk['w1'] = conv_w(nk(), 1, 1, in_ch, planes)
            blk['s1'], blk['t1'] = bn(planes)
            blk['w2'] = conv_w(nk(), 3, 3, planes, planes)
            blk['s2'], blk['t2'] = bn(planes)
            blk['w3'] = conv_w(nk(), 1, 1, planes, planes * 4)
            blk['s3'], blk['t3'] = bn(planes * 4, gamma=0.0)  # zero_init_residual=True
            if s != 1 or in_ch != planes * 4:
                blk['wd'] = conv_w(nk(), 1, 1, in_ch, planes * 4)
                blk['sd'], blk['td'] = bn(planes * 4)
            blocks.append(blk)
            in_ch = planes * 4
        layers.append(blocks)
    params['layers'] = layers

    image_feature_dim = 2048
    params['clin_w1'], params['clin_b1'] = linear(nk(), clinical_input_dim, 64)
    params['clin_w2'], params['clin_b2'] = linear(nk(), 64, fusion_dim)
    params['fusion_w'], params['fusion_b'] = linear(nk(), image_feature_dim + fusion_dim, fusion_dim)
    params['cls_w'], params['cls_b'] = linear(nk(), fusion_dim, num_classes)
    return params


if __name__ == "__main__":
    key = jax.random.PRNGKey(0)
    k_img, k_clin = jax.random.split(key)
    x_image = jax.random.normal(k_img, (2, 1, 32, 32), jnp.float32)     # NCHW, 1 channel
    x_clinical = jax.random.normal(k_clin, (2, 4), jnp.float32)

    params = init_params(seed=0, num_classes=2, clinical_input_dim=4, fusion_dim=256)
    out = resnet_forward(params, x_image, x_clinical)
    out = jax.block_until_ready(out)
    assert out.shape == (2, 2) and out.dtype == jnp.float32
    print("KERNEL_OK")
</pallas_src>

<mosaic_0001>
module attributes {stable_mosaic.version = 11 : i64} {
  func.func @_conv_tap_kernel(%arg0: i32, %arg1: i32, %arg2: memref<1x76x19x1xbf16, #tpu.memory_space<vmem>>, %arg3: memref<49x1x64xbf16, #tpu.memory_space<vmem>>, %arg4: memref<1x64xf32, #tpu.memory_space<vmem>>, %arg5: memref<1x64xf32, #tpu.memory_space<vmem>>, %arg6: memref<1x1x16x64xbf16, #tpu.memory_space<vmem>>) attributes {dimension_semantics = [#tpu.dimension_semantics<parallel>, #tpu.dimension_semantics<parallel>], iteration_bounds = array<i64: 2, 16>, scalar_prefetch = 0 : i64, scratch_operands = 0 : i64, tpu.core_type = #tpu.core_type<tc>, window_params = [{transform_indices = @transform_0, window_bounds = array<i64: 1, 76, 19, 1>}, {pipeline_mode = #tpu.pipeline_mode<synchronous>, transform_indices = @transform_1, window_bounds = array<i64: 49, 1, 64>}, {pipeline_mode = #tpu.pipeline_mode<synchronous>, transform_indices = @transform_2, window_bounds = array<i64: 1, 64>}, {pipeline_mode = #tpu.pipeline_mode<synchronous>, transform_indices = @transform_3, window_bounds = array<i64: 1, 64>}, {transform_indices = @transform_4, window_bounds = array<i64: 1, 1, 16, 64>}]} {
    %cst = arith.constant 0.000000e+00 : f32
    %0 = vector.broadcast %cst : f32 to vector<16x64xf32>
    %c0_i32 = arith.constant 0 : i32
    %1 = arith.addi %arg1, %c0_i32 : i32
    %c0 = arith.constant 0 : index
    %2 = arith.index_cast %1 : i32 to index
    %c0_0 = arith.constant 0 : index
    %c0_1 = arith.constant 0 : index
    %3 = vector.load %arg2[%c0, %2, %c0_0, %c0_1] : memref<1x76x19x1xbf16, #tpu.memory_space<vmem>>, vector<1x1x16x1xbf16>
    %4 = vector.shape_cast %3 : vector<1x1x16x1xbf16> to vector<16x1xbf16>
    %5 = arith.extf %4 : vector<16x1xbf16> to vector<16x1xf32>
    %c0_2 = arith.constant 0 : index
    %c0_3 = arith.constant 0 : index
    %c0_4 = arith.constant 0 : index
    %6 = vector.load %arg3[%c0_2, %c0_3, %c0_4] : memref<49x1x64xbf16, #tpu.memory_space<vmem>>, vector<1x1x64xbf16>
    %7 = vector.shape_cast %6 : vector<1x1x64xbf16> to vector<1x64xbf16>
    %8 = arith.extf %7 : vector<1x64xbf16> to vector<1x64xf32>
    %9 = vector.broadcast %5 : vector<16x1xf32> to vector<16x64xf32>
    %10 = vector.broadcast %8 : vector<1x64xf32> to vector<16x64xf32>
    %11 = arith.mulf %9, %10 : vector<16x64xf32>
    %12 = arith.addf %0, %11 : vector<16x64xf32>
    %c19_i32 = arith.constant 19 : i32
    %13 = arith.addi %arg1, %c19_i32 : i32
    %c0_5 = arith.constant 0 : index
    %14 = arith.index_cast %13 : i32 to index
    %c0_6 = arith.constant 0 : index
    %c0_7 = arith.constant 0 : index
    %15 = vector.load %arg2[%c0_5, %14, %c0_6, %c0_7] : memref<1x76x19x1xbf16, #tpu.memory_space<vmem>>, vector<1x1x16x1xbf16>
    %16 = vector.shape_cast %15 : vector<1x1x16x1xbf16> to vector<16x1xbf16>
    %17 = arith.extf %16 : vector<16x1xbf16> to vector<16x1xf32>
    %c1 = arith.constant 1 : index
    %c0_8 = arith.constant 0 : index
    %c0_9 = arith.constant 0 : index
    %18 = vector.load %arg3[%c1, %c0_8, %c0_9] : memref<49x1x64xbf16, #tpu.memory_space<vmem>>, vector<1x1x64xbf16>
    %19 = vector.shape_cast %18 : vector<1x1x64xbf16> to vector<1x64xbf16>
    %20 = arith.extf %19 : vector<1x64xbf16> to vector<1x64xf32>
    %21 = vector.broadcast %17 : vector<16x1xf32> to vector<16x64xf32>
    %22 = vector.broadcast %20 : vector<1x64xf32> to vector<16x64xf32>
    %23 = arith.mulf %21, %22 : vector<16x64xf32>
    %24 = arith.addf %12, %23 : vector<16x64xf32>
    %c0_i32_10 = arith.constant 0 : i32
    %25 = arith.addi %arg1, %c0_i32_10 : i32
    %c0_11 = arith.constant 0 : index
    %26 = arith.index_cast %25 : i32 to index
    %c1_12 = arith.constant 1 : index
    %c0_13 = arith.constant 0 : index
    %27 = vector.load %arg2[%c0_11, %26, %c1_12, %c0_13] : memref<1x76x19x1xbf16, #tpu.memory_space<vmem>>, vector<1x1x16x1xbf16>
    %28 = vector.shape_cast %27 : vector<1x1x16x1xbf16> to vector<16x1xbf16>
    %29 = arith.extf %28 : vector<16x1xbf16> to vector<16x1xf32>
    %c2 = arith.constant 2 : index
    %c0_14 = arith.constant 0 : index
    %c0_15 = arith.constant 0 : index
    %30 = vector.load %arg3[%c2, %c0_14, %c0_15] : memref<49x1x64xbf16, #tpu.memory_space<vmem>>, vector<1x1x64xbf16>
    %31 = vector.shape_cast %30 : vector<1x1x64xbf16> to vector<1x64xbf16>
    %32 = arith.extf %31 : vector<1x64xbf16> to vector<1x64xf32>
    %33 = vector.broadcast %29 : vector<16x1xf32> to vector<16x64xf32>
    %34 = vector.broadcast %32 : vector<1x64xf32> to vector<16x64xf32>
    %35 = arith.mulf %33, %34 : vector<16x64xf32>
    %36 = arith.addf %24, %35 : vector<16x64xf32>
    %c19_i32_16 = arith.constant 19 : i32
    %37 = arith.addi %arg1, %c19_i32_16 : i32
    %c0_17 = arith.constant 0 : index
    %38 = arith.index_cast %37 : i32 to index
    %c1_18 = arith.constant 1 : index
    %c0_19 = arith.constant 0 : index
    %39 = vector.load %arg2[%c0_17, %38, %c1_18, %c0_19] : memref<1x76x19x1xbf16, #tpu.memory_space<vmem>>, vector<1x1x16x1xbf16>
    %40 = vector.shape_cast %39 : vector<1x1x16x1xbf16> to vector<16x1xbf16>
    %41 = arith.extf %40 : vector<16x1xbf16> to vector<16x1xf32>
    %c3 = arith.constant 3 : index
    %c0_20 = arith.constant 0 : index
    %c0_21 = arith.constant 0 : index
    %42 = vector.load %arg3[%c3, %c0_20, %c0_21] : memref<49x1x64xbf16, #tpu.memory_space<vmem>>, vector<1x1x64xbf16>
    %43 = vector.shape_cast %42 : vector<1x1x64xbf16> to vector<1x64xbf16>
    %44 = arith.extf %43 : vector<1x64xbf16> to vector<1x64xf32>
    %45 = vector.broadcast %41 : vector<16x1xf32> to vector<16x64xf32>
    %46 = vector.broadcast %44 : vector<1x64xf32> to vector<16x64xf32>
    %47 = arith.mulf %45, %46 : vector<16x64xf32>
    %48 = arith.addf %36, %47 : vector<16x64xf32>
    %c0_i32_22 = arith.constant 0 : i32
    %49 = arith.addi %arg1, %c0_i32_22 : i32
    %c0_23 = arith.constant 0 : index
    %50 = arith.index_cast %49 : i32 to index
    %c2_24 = arith.constant 2 : index
    %c0_25 = arith.constant 0 : index
    %51 = vector.load %arg2[%c0_23, %50, %c2_24, %c0_25] : memref<1x76x19x1xbf16, #tpu.memory_space<vmem>>, vector<1x1x16x1xbf16>
    %52 = vector.shape_cast %51 : vector<1x1x16x1xbf16> to vector<16x1xbf16>
    %53 = arith.extf %52 : vector<16x1xbf16> to vector<16x1xf32>
    %c4 = arith.constant 4 : index
    %c0_26 = arith.constant 0 : index
    %c0_27 = arith.constant 0 : index
    %54 = vector.load %arg3[%c4, %c0_26, %c0_27] : memref<49x1x64xbf16, #tpu.memory_space<vmem>>, vector<1x1x64xbf16>
    %55 = vector.shape_cast %54 : vector<1x1x64xbf16> to vector<1x64xbf16>
    %56 = arith.extf %55 : vector<1x64xbf16> to vector<1x64xf32>
    %57 = vector.broadcast %53 : vector<16x1xf32> to vector<16x64xf32>
    %58 = vector.broadcast %56 : vector<1x64xf32> to vector<16x64xf32>
    %59 = arith.mulf %57, %58 : vector<16x64xf32>
    %60 = arith.addf %48, %59 : vector<16x64xf32>
    %c19_i32_28 = arith.constant 19 : i32
    %61 = arith.addi %arg1, %c19_i32_28 : i32
    %c0_29 = arith.constant 0 : index
    %62 = arith.index_cast %61 : i32 to index
    %c2_30 = arith.constant 2 : index
    %c0_31 = arith.constant 0 : index
    %63 = vector.load %arg2[%c0_29, %62, %c2_30, %c0_31] : memref<1x76x19x1xbf16, #tpu.memory_space<vmem>>, vector<1x1x16x1xbf16>
    %64 = vector.shape_cast %63 : vector<1x1x16x1xbf16> to vector<16x1xbf16>
    %65 = arith.extf %64 : vector<16x1xbf16> to vector<16x1xf32>
    %c5 = arith.constant 5 : index
    %c0_32 = arith.constant 0 : index
    %c0_33 = arith.constant 0 : index
    %66 = vector.load %arg3[%c5, %c0_32, %c0_33] : memref<49x1x64xbf16, #tpu.memory_space<vmem>>, vector<1x1x64xbf16>
    %67 = vector.shape_cast %66 : vector<1x1x64xbf16> to vector<1x64xbf16>
    %68 = arith.extf %67 : vector<1x64xbf16> to vector<1x64xf32>
    %69 = vector.broadcast %65 : vector<16x1xf32> to vector<16x64xf32>
    %70 = vector.broadcast %68 : vector<1x64xf32> to vector<16x64xf32>
    %71 = arith.mulf %69, %70 : vector<16x64xf32>
    %72 = arith.addf %60, %71 : vector<16x64xf32>
    %c0_i32_34 = arith.constant 0 : i32
    %73 = arith.addi %arg1, %c0_i32_34 : i32
    %c0_35 = arith.constant 0 : index
    %74 = arith.index_cast %73 : i32 to index
    %c3_36 = arith.constant 3 : index
    %c0_37 = arith.constant 0 : index
    %75 = vector.load %arg2[%c0_35, %74, %c3_36, %c0_37] : memref<1x76x19x1xbf16, #tpu.memory_space<vmem>>, vector<1x1x16x1xbf16>
    %76 = vector.shape_cast %75 : vector<1x1x16x1xbf16> to vector<16x1xbf16>
    %77 = arith.extf %76 : vector<16x1xbf16> to vector<16x1xf32>
    %c6 = arith.constant 6 : index
    %c0_38 = arith.constant 0 : index
    %c0_39 = arith.constant 0 : index
    %78 = vector.load %arg3[%c6, %c0_38, %c0_39] : memref<49x1x64xbf16, #tpu.memory_space<vmem>>, vector<1x1x64xbf16>
    %79 = vector.shape_cast %78 : vector<1x1x64xbf16> to vector<1x64xbf16>
    %80 = arith.extf %79 : vector<1x64xbf16> to vector<1x64xf32>
    %81 = vector.broadcast %77 : vector<16x1xf32> to vector<16x64xf32>
    %82 = vector.broadcast %80 : vector<1x64xf32> to vector<16x64xf32>
    %83 = arith.mulf %81, %82 : vector<16x64xf32>
    %84 = arith.addf %72, %83 : vector<16x64xf32>
    %c38_i32 = arith.constant 38 : i32
    %85 = arith.addi %arg1, %c38_i32 : i32
    %c0_40 = arith.constant 0 : index
    %86 = arith.index_cast %85 : i32 to index
    %c0_41 = arith.constant 0 : index
    %c0_42 = arith.constant 0 : index
    %87 = vector.load %arg2[%c0_40, %86, %c0_41, %c0_42] : memref<1x76x19x1xbf16, #tpu.memory_space<vmem>>, vector<1x1x16x1xbf16>
    %88 = vector.shape_cast %87 : vector<1x1x16x1xbf16> to vector<16x1xbf16>
    %89 = arith.extf %88 : vector<16x1xbf16> to vector<16x1xf32>
    %c7 = arith.constant 7 : index
    %c0_43 = arith.constant 0 : index
    %c0_44 = arith.constant 0 : index
    %90 = vector.load %arg3[%c7, %c0_43, %c0_44] : memref<49x1x64xbf16, #tpu.memory_space<vmem>>, vector<1x1x64xbf16>
    %91 = vector.shape_cast %90 : vector<1x1x64xbf16> to vector<1x64xbf16>
    %92 = arith.extf %91 : vector<1x64xbf16> to vector<1x64xf32>
    %93 = vector.broadcast %89 : vector<16x1xf32> to vector<16x64xf32>
    %94 = vector.broadcast %92 : vector<1x64xf32> to vector<16x64xf32>
    %95 = arith.mulf %93, %94 : vector<16x64xf32>
    %96 = arith.addf %84, %95 : vector<16x64xf32>
    %c57_i32 = arith.constant 57 : i32
    %97 = arith.addi %arg1, %c57_i32 : i32
    %c0_45 = arith.constant 0 : index
    %98 = arith.index_cast %97 : i32 to index
    %c0_46 = arith.constant 0 : index
    %c0_47 = arith.constant 0 : index
    %99 = vector.load %arg2[%c0_45, %98, %c0_46, %c0_47] : memref<1x76x19x1xbf16, #tpu.memory_space<vmem>>, vector<1x1x16x1xbf16>
    %100 = vector.shape_cast %99 : vector<1x1x16x1xbf16> to vector<16x1xbf16>
    %101 = arith.extf %100 : vector<16x1xbf16> to vector<16x1xf32>
    %c8 = arith.constant 8 : index
    %c0_48 = arith.constant 0 : index
    %c0_49 = arith.constant 0 : index
    %102 = vector.load %arg3[%c8, %c0_48, %c0_49] : memref<49x1x64xbf16, #tpu.memory_space<vmem>>, vector<1x1x64xbf16>
    %103 = vector.shape_cast %102 : vector<1x1x64xbf16> to vector<1x64xbf16>
    %104 = arith.extf %103 : vector<1x64xbf16> to vector<1x64xf32>
    %105 = vector.broadcast %101 : vector<16x1xf32> to vector<16x64xf32>
    %106 = vector.broadcast %104 : vector<1x64xf32> to vector<16x64xf32>
    %107 = arith.mulf %105, %106 : vector<16x64xf32>
    %108 = arith.addf %96, %107 : vector<16x64xf32>
    %c38_i32_50 = arith.constant 38 : i32
    %109 = arith.addi %arg1, %c38_i32_50 : i32
    %c0_51 = arith.constant 0 : index
    %110 = arith.index_cast %109 : i32 to index
    %c1_52 = arith.constant 1 : index
    %c0_53 = arith.constant 0 : index
    %111 = vector.load %arg2[%c0_51, %110, %c1_52, %c0_53] : memref<1x76x19x1xbf16, #tpu.memory_space<vmem>>, vector<1x1x16x1xbf16>
    %112 = vector.shape_cast %111 : vector<1x1x16x1xbf16> to vector<16x1xbf16>
    %113 = arith.extf %112 : vector<16x1xbf16> to vector<16x1xf32>
    %c9 = arith.constant 9 : index
    %c0_54 = arith.constant 0 : index
    %c0_55 = arith.constant 0 : index
    %114 = vector.load %arg3[%c9, %c0_54, %c0_55] : memref<49x1x64xbf16, #tpu.memory_space<vmem>>, vector<1x1x64xbf16>
    %115 = vector.shape_cast %114 : vector<1x1x64xbf16> to vector<1x64xbf16>
    %116 = arith.extf %115 : vector<1x64xbf16> to vector<1x64xf32>
    %117 = vector.broadcast %113 : vector<16x1xf32> to vector<16x64xf32>
    %118 = vector.broadcast %116 : vector<1x64xf32> to vector<16x64xf32>
    %119 = arith.mulf %117, %118 : vector<16x64xf32>
    %120 = arith.addf %108, %119 : vector<16x64xf32>
    %c57_i32_56 = arith.constant 57 : i32
    %121 = arith.addi %arg1, %c57_i32_56 : i32
    %c0_57 = arith.constant 0 : index
    %122 = arith.index_cast %121 : i32 to index
    %c1_58 = arith.constant 1 : index
    %c0_59 = arith.constant 0 : index
    %123 = vector.load %arg2[%c0_57, %122, %c1_58, %c0_59] : memref<1x76x19x1xbf16, #tpu.memory_space<vmem>>, vector<1x1x16x1xbf16>
    %124 = vector.shape_cast %123 : vector<1x1x16x1xbf16> to vector<16x1xbf16>
    %125 = arith.extf %124 : vector<16x1xbf16> to vector<16x1xf32>
    %c10 = arith.constant 10 : index
    %c0_60 = arith.constant 0 : index
    %c0_61 = arith.constant 0 : index
    %126 = vector.load %arg3[%c10, %c0_60, %c0_61] : memref<49x1x64xbf16, #tpu.memory_space<vmem>>, vector<1x1x64xbf16>
    %127 = vector.shape_cast %126 : vector<1x1x64xbf16> to vector<1x64xbf16>
    %128 = arith.extf %127 : vector<1x64xbf16> to vector<1x64xf32>
    %129 = vector.broadcast %125 : vector<16x1xf32> to vector<16x64xf32>
    %130 = vector.broadcast %128 : vector<1x64xf32> to vector<16x64xf32>
    %131 = arith.mulf %129, %130 : vector<16x64xf32>
    %132 = arith.addf %120, %131 : vector<16x64xf32>
    %c38_i32_62 = arith.constant 38 : i32
    %133 = arith.addi %arg1, %c38_i32_62 : i32
    %c0_63 = arith.constant 0 : index
    %134 = arith.index_cast %133 : i32 to index
    %c2_64 = arith.constant 2 : index
    %c0_65 = arith.constant 0 : index
    %135 = vector.load %arg2[%c0_63, %134, %c2_64, %c0_65] : memref<1x76x19x1xbf16, #tpu.memory_space<vmem>>, vector<1x1x16x1xbf16>
    %136 = vector.shape_cast %135 : vector<1x1x16x1xbf16> to vector<16x1xbf16>
    %137 = arith.extf %136 : vector<16x1xbf16> to vector<16x1xf32>
    %c11 = arith.constant 11 : index
    %c0_66 = arith.constant 0 : index
    %c0_67 = arith.constant 0 : index
    %138 = vector.load %arg3[%c11, %c0_66, %c0_67] : memref<49x1x64xbf16, #tpu.memory_space<vmem>>, vector<1x1x64xbf16>
    %139 = vector.shape_cast %138 : vector<1x1x64xbf16> to vector<1x64xbf16>
    %140 = arith.extf %139 : vector<1x64xbf16> to vector<1x64xf32>
    %141 = vector.broadcast %137 : vector<16x1xf32> to vector<16x64xf32>
    %142 = vector.broadcast %140 : vector<1x64xf32> to vector<16x64xf32>
    %143 = arith.mulf %141, %142 : vector<16x64xf32>
    %144 = arith.addf %132, %143 : vector<16x64xf32>
    %c57_i32_68 = arith.constant 57 : i32
    %145 = arith.addi %arg1, %c57_i32_68 : i32
    %c0_69 = arith.constant 0 : index
    %146 = arith.index_cast %145 : i32 to index
    %c2_70 = arith.constant 2 : index
    %c0_71 = arith.constant 0 : index
    %147 = vector.load %arg2[%c0_69, %146, %c2_70, %c0_71] : memref<1x76x19x1xbf16, #tpu.memory_space<vmem>>, vector<1x1x16x1xbf16>
    %148 = vector.shape_cast %147 : vector<1x1x16x1xbf16> to vector<16x1xbf16>
    %149 = arith.extf %148 : vector<16x1xbf16> to vector<16x1xf32>
    %c12 = arith.constant 12 : index
    %c0_72 = arith.constant 0 : index
    %c0_73 = arith.constant 0 : index
    %150 = vector.load %arg3[%c12, %c0_72, %c0_73] : memref<49x1x64xbf16, #tpu.memory_space<vmem>>, vector<1x1x64xbf16>
    %151 = vector.shape_cast %150 : vector<1x1x64xbf16> to vector<1x64xbf16>
    %152 = arith.extf %151 : vector<1x64xbf16> to vector<1x64xf32>
    %153 = vector.broadcast %149 : vector<16x1xf32> to vector<16x64xf32>
    %154 = vector.broadcast %152 : vector<1x64xf32> to vector<16x64xf32>
    %155 = arith.mulf %153, %154 : vector<16x64xf32>
    %156 = arith.addf %144, %155 : vector<16x64xf32>
    %c38_i32_74 = arith.constant 38 : i32
    %157 = arith.addi %arg1, %c38_i32_74 : i32
    %c0_75 = arith.constant 0 : index
    %158 = arith.index_cast %157 : i32 to index
    %c3_76 = arith.constant 3 : index
    %c0_77 = arith.constant 0 : index
    %159 = vector.load %arg2[%c0_75, %158, %c3_76, %c0_77] : memref<1x76x19x1xbf16, #tpu.memory_space<vmem>>, vector<1x1x16x1xbf16>
    %160 = vector.shape_cast %159 : vector<1x1x16x1xbf16> to vector<16x1xbf16>
    %161 = arith.extf %160 : vector<16x1xbf16> to vector<16x1xf32>
    %c13 = arith.constant 13 : index
    %c0_78 = arith.constant 0 : index
    %c0_79 = arith.constant 0 : index
    %162 = vector.load %arg3[%c13, %c0_78, %c0_79] : memref<49x1x64xbf16, #tpu.memory_space<vmem>>, vector<1x1x64xbf16>
    %163 = vector.shape_cast %162 : vector<1x1x64xbf16> to vector<1x64xbf16>
    %164 = arith.extf %163 : vector<1x64xbf16> to vector<1x64xf32>
    %165 = vector.broadcast %161 : vector<16x1xf32> to vector<16x64xf32>
    %166 = vector.broadcast %164 : vector<1x64xf32> to vector<16x64xf32>
    %167 = arith.mulf %165, %166 : vector<16x64xf32>
    %168 = arith.addf %156, %167 : vector<16x64xf32>
    %c1_i32 = arith.constant 1 : i32
    %169 = arith.addi %arg1, %c1_i32 : i32
    %c0_80 = arith.constant 0 : index
    %170 = arith.index_cast %169 : i32 to index
    %c0_81 = arith.constant 0 : index
    %c0_82 = arith.constant 0 : index
    %171 = vector.load %arg2[%c0_80, %170, %c0_81, %c0_82] : memref<1x76x19x1xbf16, #tpu.memory_space<vmem>>, vector<1x1x16x1xbf16>
    %172 = vector.shape_cast %171 : vector<1x1x16x1xbf16> to vector<16x1xbf16>
    %173 = arith.extf %172 : vector<16x1xbf16> to vector<16x1xf32>
    %c14 = arith.constant 14 : index
    %c0_83 = arith.constant 0 : index
    %c0_84 = arith.constant 0 : index
    %174 = vector.load %arg3[%c14, %c0_83, %c0_84] : memref<49x1x64xbf16, #tpu.memory_space<vmem>>, vector<1x1x64xbf16>
    %175 = vector.shape_cast %174 : vector<1x1x64xbf16> to vector<1x64xbf16>
    %176 = arith.extf %175 : vector<1x64xbf16> to vector<1x64xf32>
    %177 = vector.broadcast %173 : vector<16x1xf32> to vector<16x64xf32>
    %178 = vector.broadcast %176 : vector<1x64xf32> to vector<16x64xf32>
    %179 = arith.mulf %177, %178 : vector<16x64xf32>
    %180 = arith.addf %168, %179 : vector<16x64xf32>
    %c20_i32 = arith.constant 20 : i32
    %181 = arith.addi %arg1, %c20_i32 : i32
    %c0_85 = arith.constant 0 : index
    %182 = arith.index_cast %181 : i32 to index
    %c0_86 = arith.constant 0 : index
    %c0_87 = arith.constant 0 : index
    %183 = vector.load %arg2[%c0_85, %182, %c0_86, %c0_87] : memref<1x76x19x1xbf16, #tpu.memory_space<vmem>>, vector<1x1x16x1xbf16>
    %184 = vector.shape_cast %183 : vector<1x1x16x1xbf16> to vector<16x1xbf16>
    %185 = arith.extf %184 : vector<16x1xbf16> to vector<16x1xf32>
    %c15 = arith.constant 15 : index
    %c0_88 = arith.constant 0 : index
    %c0_89 = arith.constant 0 : index
    %186 = vector.load %arg3[%c15, %c0_88, %c0_89] : memref<49x1x64xbf16, #tpu.memory_space<vmem>>, vector<1x1x64xbf16>
    %187 = vector.shape_cast %186 : vector<1x1x64xbf16> to vector<1x64xbf16>
    %188 = arith.extf %187 : vector<1x64xbf16> to vector<1x64xf32>
    %189 = vector.broadcast %185 : vector<16x1xf32> to vector<16x64xf32>
    %190 = vector.broadcast %188 : vector<1x64xf32> to vector<16x64xf32>
    %191 = arith.mulf %189, %190 : vector<16x64xf32>
    %192 = arith.addf %180, %191 : vector<16x64xf32>
    %c1_i32_90 = arith.constant 1 : i32
    %193 = arith.addi %arg1, %c1_i32_90 : i32
    %c0_91 = arith.constant 0 : index
    %194 = arith.index_cast %193 : i32 to index
    %c1_92 = arith.constant 1 : index
    %c0_93 = arith.constant 0 : index
    %195 = vector.load %arg2[%c0_91, %194, %c1_92, %c0_93] : memref<1x76x19x1xbf16, #tpu.memory_space<vmem>>, vector<1x1x16x1xbf16>
    %196 = vector.shape_cast %195 : vector<1x1x16x1xbf16> to vector<16x1xbf16>
    %197 = arith.extf %196 : vector<16x1xbf16> to vector<16x1xf32>
    %c16 = arith.constant 16 : index
    %c0_94 = arith.constant 0 : index
    %c0_95 = arith.constant 0 : index
    %198 = vector.load %arg3[%c16, %c0_94, %c0_95] : memref<49x1x64xbf16, #tpu.memory_space<vmem>>, vector<1x1x64xbf16>
    %199 = vector.shape_cast %198 : vector<1x1x64xbf16> to vector<1x64xbf16>
    %200 = arith.extf %199 : vector<1x64xbf16> to vector<1x64xf32>
    %201 = vector.broadcast %197 : vector<16x1xf32> to vector<16x64xf32>
    %202 = vector.broadcast %200 : vector<1x64xf32> to vector<16x64xf32>
    %203 = arith.mulf %201, %202 : vector<16x64xf32>
    %204 = arith.addf %192, %203 : vector<16x64xf32>
    %c20_i32_96 = arith.constant 20 : i32
    %205 = arith.addi %arg1, %c20_i32_96 : i32
    %c0_97 = arith.constant 0 : index
    %206 = arith.index_cast %205 : i32 to index
    %c1_98 = arith.constant 1 : index
    %c0_99 = arith.constant 0 : index
    %207 = vector.load %arg2[%c0_97, %206, %c1_98, %c0_99] : memref<1x76x19x1xbf16, #tpu.memory_space<vmem>>, vector<1x1x16x1xbf16>
    %208 = vector.shape_cast %207 : vector<1x1x16x1xbf16> to vector<16x1xbf16>
    %209 = arith.extf %208 : vector<16x1xbf16> to vector<16x1xf32>
    %c17 = arith.constant 17 : index
    %c0_100 = arith.constant 0 : index
    %c0_101 = arith.constant 0 : index
    %210 = vector.load %arg3[%c17, %c0_100, %c0_101] : memref<49x1x64xbf16, #tpu.memory_space<vmem>>, vector<1x1x64xbf16>
    %211 = vector.shape_cast %210 : vector<1x1x64xbf16> to vector<1x64xbf16>
    %212 = arith.extf %211 : vector<1x64xbf16> to vector<1x64xf32>
    %213 = vector.broadcast %209 : vector<16x1xf32> to vector<16x64xf32>
    %214 = vector.broadcast %212 : vector<1x64xf32> to vector<16x64xf32>
    %215 = arith.mulf %213, %214 : vector<16x64xf32>
    %216 = arith.addf %204, %215 : vector<16x64xf32>
    %c1_i32_102 = arith.constant 1 : i32
    %217 = arith.addi %arg1, %c1_i32_102 : i32
    %c0_103 = arith.constant 0 : index
    %218 = arith.index_cast %217 : i32 to index
    %c2_104 = arith.constant 2 : index
    %c0_105 = arith.constant 0 : index
    %219 = vector.load %arg2[%c0_103, %218, %c2_104, %c0_105] : memref<1x76x19x1xbf16, #tpu.memory_space<vmem>>, vector<1x1x16x1xbf16>
    %220 = vector.shape_cast %219 : vector<1x1x16x1xbf16> to vector<16x1xbf16>
    %221 = arith.extf %220 : vector<16x1xbf16> to vector<16x1xf32>
    %c18 = arith.constant 18 : index
    %c0_106 = arith.constant 0 : index
    %c0_107 = arith.constant 0 : index
    %222 = vector.load %arg3[%c18, %c0_106, %c0_107] : memref<49x1x64xbf16, #tpu.memory_space<vmem>>, vector<1x1x64xbf16>
    %223 = vector.shape_cast %222 : vector<1x1x64xbf16> to vector<1x64xbf16>
    %224 = arith.extf %223 : vector<1x64xbf16> to vector<1x64xf32>
    %225 = vector.broadcast %221 : vector<16x1xf32> to vector<16x64xf32>
    %226 = vector.broadcast %224 : vector<1x64xf32> to vector<16x64xf32>
    %227 = arith.mulf %225, %226 : vector<16x64xf32>
    %228 = arith.addf %216, %227 : vector<16x64xf32>
    %c20_i32_108 = arith.constant 20 : i32
    %229 = arith.addi %arg1, %c20_i32_108 : i32
    %c0_109 = arith.constant 0 : index
    %230 = arith.index_cast %229 : i32 to index
    %c2_110 = arith.constant 2 : index
    %c0_111 = arith.constant 0 : index
    %231 = vector.load %arg2[%c0_109, %230, %c2_110, %c0_111] : memref<1x76x19x1xbf16, #tpu.memory_space<vmem>>, vector<1x1x16x1xbf16>
    %232 = vector.shape_cast %231 : vector<1x1x16x1xbf16> to vector<16x1xbf16>
    %233 = arith.extf %232 : vector<16x1xbf16> to vector<16x1xf32>
    %c19 = arith.constant 19 : index
    %c0_112 = arith.constant 0 : index
    %c0_113 = arith.constant 0 : index
    %234 = vector.load %arg3[%c19, %c0_112, %c0_113] : memref<49x1x64xbf16, #tpu.memory_space<vmem>>, vector<1x1x64xbf16>
    %235 = vector.shape_cast %234 : vector<1x1x64xbf16> to vector<1x64xbf16>
    %236 = arith.extf %235 : vector<1x64xbf16> to vector<1x64xf32>
    %237 = vector.broadcast %233 : vector<16x1xf32> to vector<16x64xf32>
    %238 = vector.broadcast %236 : vector<1x64xf32> to vector<16x64xf32>
    %239 = arith.mulf %237, %238 : vector<16x64xf32>
    %240 = arith.addf %228, %239 : vector<16x64xf32>
    %c1_i32_114 = arith.constant 1 : i32
    %241 = arith.addi %arg1, %c1_i32_114 : i32
    %c0_115 = arith.constant 0 : index
    %242 = arith.index_cast %241 : i32 to index
    %c3_116 = arith.constant 3 : index
    %c0_117 = arith.constant 0 : index
    %243 = vector.load %arg2[%c0_115, %242, %c3_116, %c0_117] : memref<1x76x19x1xbf16, #tpu.memory_space<vmem>>, vector<1x1x16x1xbf16>
    %244 = vector.shape_cast %243 : vector<1x1x16x1xbf16> to vector<16x1xbf16>
    %245 = arith.extf %244 : vector<16x1xbf16> to vector<16x1xf32>
    %c20 = arith.constant 20 : index
    %c0_118 = arith.constant 0 : index
    %c0_119 = arith.constant 0 : index
    %246 = vector.load %arg3[%c20, %c0_118, %c0_119] : memref<49x1x64xbf16, #tpu.memory_space<vmem>>, vector<1x1x64xbf16>
    %247 = vector.shape_cast %246 : vector<1x1x64xbf16> to vector<1x64xbf16>
    %248 = arith.extf %247 : vector<1x64xbf16> to vector<1x64xf32>
    %249 = vector.broadcast %245 : vector<16x1xf32> to vector<16x64xf32>
    %250 = vector.broadcast %248 : vector<1x64xf32> to vector<16x64xf32>
    %251 = arith.mulf %249, %250 : vector<16x64xf32>
    %252 = arith.addf %240, %251 : vector<16x64xf32>
    %c39_i32 = arith.constant 39 : i32
    %253 = arith.addi %arg1, %c39_i32 : i32
    %c0_120 = arith.constant 0 : index
    %254 = arith.index_cast %253 : i32 to index
    %c0_121 = arith.constant 0 : index
    %c0_122 = arith.constant 0 : index
    %255 = vector.load %arg2[%c0_120, %254, %c0_121, %c0_122] : memref<1x76x19x1xbf16, #tpu.memory_space<vmem>>, vector<1x1x16x1xbf16>
    %256 = vector.shape_cast %255 : vector<1x1x16x1xbf16> to vector<16x1xbf16>
    %257 = arith.extf %256 : vector<16x1xbf16> to vector<16x1xf32>
    %c21 = arith.constant 21 : index
    %c0_123 = arith.constant 0 : index
    %c0_124 = arith.constant 0 : index
    %258 = vector.load %arg3[%c21, %c0_123, %c0_124] : memref<49x1x64xbf16, #tpu.memory_space<vmem>>, vector<1x1x64xbf16>
    %259 = vector.shape_cast %258 : vector<1x1x64xbf16> to vector<1x64xbf16>
    %260 = arith.extf %259 : vector<1x64xbf16> to vector<1x64xf32>
    %261 = vector.broadcast %257 : vector<16x1xf32> to vector<16x64xf32>
    %262 = vector.broadcast %260 : vector<1x64xf32> to vector<16x64xf32>
    %263 = arith.mulf %261, %262 : vector<16x64xf32>
    %264 = arith.addf %252, %263 : vector<16x64xf32>
    %c58_i32 = arith.constant 58 : i32
    %265 = arith.addi %arg1, %c58_i32 : i32
    %c0_125 = arith.constant 0 : index
    %266 = arith.index_cast %265 : i32 to index
    %c0_126 = arith.constant 0 : index
    %c0_127 = arith.constant 0 : index
    %267 = vector.load %arg2[%c0_125, %266, %c0_126, %c0_127] : memref<1x76x19x1xbf16, #tpu.memory_space<vmem>>, vector<1x1x16x1xbf16>
    %268 = vector.shape_cast %267 : vector<1x1x16x1xbf16> to vector<16x1xbf16>
    %269 = arith.extf %268 : vector<16x1xbf16> to vector<16x1xf32>
    %c22 = arith.constant 22 : index
    %c0_128 = arith.constant 0 : index
    %c0_129 = arith.constant 0 : index
    %270 = vector.load %arg3[%c22, %c0_128, %c0_129] : memref<49x1x64xbf16, #tpu.memory_space<vmem>>, vector<1x1x64xbf16>
    %271 = vector.shape_cast %270 : vector<1x1x64xbf16> to vector<1x64xbf16>
    %272 = arith.extf %271 : vector<1x64xbf16> to vector<1x64xf32>
    %273 = vector.broadcast %269 : vector<16x1xf32> to vector<16x64xf32>
    %274 = vector.broadcast %272 : vector<1x64xf32> to vector<16x64xf32>
    %275 = arith.mulf %273, %274 : vector<16x64xf32>
    %276 = arith.addf %264, %275 : vector<16x64xf32>
    %c39_i32_130 = arith.constant 39 : i32
    %277 = arith.addi %arg1, %c39_i32_130 : i32
    %c0_131 = arith.constant 0 : index
    %278 = arith.index_cast %277 : i32 to index
    %c1_132 = arith.constant 1 : index
    %c0_133 = arith.constant 0 : index
    %279 = vector.load %arg2[%c0_131, %278, %c1_132, %c0_133] : memref<1x76x19x1xbf16, #tpu.memory_space<vmem>>, vector<1x1x16x1xbf16>
    %280 = vector.shape_cast %279 : vector<1x1x16x1xbf16> to vector<16x1xbf16>
    %281 = arith.extf %280 : vector<16x1xbf16> to vector<16x1xf32>
    %c23 = arith.constant 23 : index
    %c0_134 = arith.constant 0 : index
    %c0_135 = arith.constant 0 : index
    %282 = vector.load %arg3[%c23, %c0_134, %c0_135] : memref<49x1x64xbf16, #tpu.memory_space<vmem>>, vector<1x1x64xbf16>
    %283 = vector.shape_cast %282 : vector<1x1x64xbf16> to vector<1x64xbf16>
    %284 = arith.extf %283 : vector<1x64xbf16> to vector<1x64xf32>
    %285 = vector.broadcast %281 : vector<16x1xf32> to vector<16x64xf32>
    %286 = vector.broadcast %284 : vector<1x64xf32> to vector<16x64xf32>
    %287 = arith.mulf %285, %286 : vector<16x64xf32>
    %288 = arith.addf %276, %287 : vector<16x64xf32>
    %c58_i32_136 = arith.constant 58 : i32
    %289 = arith.addi %arg1, %c58_i32_136 : i32
    %c0_137 = arith.constant 0 : index
    %290 = arith.index_cast %289 : i32 to index
    %c1_138 = arith.constant 1 : index
    %c0_139 = arith.constant 0 : index
    %291 = vector.load %arg2[%c0_137, %290, %c1_138, %c0_139] : memref<1x76x19x1xbf16, #tpu.memory_space<vmem>>, vector<1x1x16x1xbf16>
    %292 = vector.shape_cast %291 : vector<1x1x16x1xbf16> to vector<16x1xbf16>
    %293 = arith.extf %292 : vector<16x1xbf16> to vector<16x1xf32>
    %c24 = arith.constant 24 : index
    %c0_140 = arith.constant 0 : index
    %c0_141 = arith.constant 0 : index
    %294 = vector.load %arg3[%c24, %c0_140, %c0_141] : memref<49x1x64xbf16, #tpu.memory_space<vmem>>, vector<1x1x64xbf16>
    %295 = vector.shape_cast %294 : vector<1x1x64xbf16> to vector<1x64xbf16>
    %296 = arith.extf %295 : vector<1x64xbf16> to vector<1x64xf32>
    %297 = vector.broadcast %293 : vector<16x1xf32> to vector<16x64xf32>
    %298 = vector.broadcast %296 : vector<1x64xf32> to vector<16x64xf32>
    %299 = arith.mulf %297, %298 : vector<16x64xf32>
    %300 = arith.addf %288, %299 : vector<16x64xf32>
    %c39_i32_142 = arith.constant 39 : i32
    %301 = arith.addi %arg1, %c39_i32_142 : i32
    %c0_143 = arith.constant 0 : index
    %302 = arith.index_cast %301 : i32 to index
    %c2_144 = arith.constant 2 : index
    %c0_145 = arith.constant 0 : index
    %303 = vector.load %arg2[%c0_143, %302, %c2_144, %c0_145] : memref<1x76x19x1xbf16, #tpu.memory_space<vmem>>, vector<1x1x16x1xbf16>
    %304 = vector.shape_cast %303 : vector<1x1x16x1xbf16> to vector<16x1xbf16>
    %305 = arith.extf %304 : vector<16x1xbf16> to vector<16x1xf32>
    %c25 = arith.constant 25 : index
    %c0_146 = arith.constant 0 : index
    %c0_147 = arith.constant 0 : index
    %306 = vector.load %arg3[%c25, %c0_146, %c0_147] : memref<49x1x64xbf16, #tpu.memory_space<vmem>>, vector<1x1x64xbf16>
    %307 = vector.shape_cast %306 : vector<1x1x64xbf16> to vector<1x64xbf16>
    %308 = arith.extf %307 : vector<1x64xbf16> to vector<1x64xf32>
    %309 = vector.broadcast %305 : vector<16x1xf32> to vector<16x64xf32>
    %310 = vector.broadcast %308 : vector<1x64xf32> to vector<16x64xf32>
    %311 = arith.mulf %309, %310 : vector<16x64xf32>
    %312 = arith.addf %300, %311 : vector<16x64xf32>
    %c58_i32_148 = arith.constant 58 : i32
    %313 = arith.addi %arg1, %c58_i32_148 : i32
    %c0_149 = arith.constant 0 : index
    %314 = arith.index_cast %313 : i32 to index
    %c2_150 = arith.constant 2 : index
    %c0_151 = arith.constant 0 : index
    %315 = vector.load %arg2[%c0_149, %314, %c2_150, %c0_151] : memref<1x76x19x1xbf16, #tpu.memory_space<vmem>>, vector<1x1x16x1xbf16>
    %316 = vector.shape_cast %315 : vector<1x1x16x1xbf16> to vector<16x1xbf16>
    %317 = arith.extf %316 : vector<16x1xbf16> to vector<16x1xf32>
    %c26 = arith.constant 26 : index
    %c0_152 = arith.constant 0 : index
    %c0_153 = arith.constant 0 : index
    %318 = vector.load %arg3[%c26, %c0_152, %c0_153] : memref<49x1x64xbf16, #tpu.memory_space<vmem>>, vector<1x1x64xbf16>
    %319 = vector.shape_cast %318 : vector<1x1x64xbf16> to vector<1x64xbf16>
    %320 = arith.extf %319 : vector<1x64xbf16> to vector<1x64xf32>
    %321 = vector.broadcast %317 : vector<16x1xf32> to vector<16x64xf32>
    %322 = vector.broadcast %320 : vector<1x64xf32> to vector<16x64xf32>
    %323 = arith.mulf %321, %322 : vector<16x64xf32>
    %324 = arith.addf %312, %323 : vector<16x64xf32>
    %c39_i32_154 = arith.constant 39 : i32
    %325 = arith.addi %arg1, %c39_i32_154 : i32
    %c0_155 = arith.constant 0 : index
    %326 = arith.index_cast %325 : i32 to index
    %c3_156 = arith.constant 3 : index
    %c0_157 = arith.constant 0 : index
    %327 = vector.load %arg2[%c0_155, %326, %c3_156, %c0_157] : memref<1x76x19x1xbf16, #tpu.memory_space<vmem>>, vector<1x1x16x1xbf16>
    %328 = vector.shape_cast %327 : vector<1x1x16x1xbf16> to vector<16x1xbf16>
    %329 = arith.extf %328 : vector<16x1xbf16> to vector<16x1xf32>
    %c27 = arith.constant 27 : index
    %c0_158 = arith.constant 0 : index
    %c0_159 = arith.constant 0 : index
    %330 = vector.load %arg3[%c27, %c0_158, %c0_159] : memref<49x1x64xbf16, #tpu.memory_space<vmem>>, vector<1x1x64xbf16>
    %331 = vector.shape_cast %330 : vector<1x1x64xbf16> to vector<1x64xbf16>
    %332 = arith.extf %331 : vector<1x64xbf16> to vector<1x64xf32>
    %333 = vector.broadcast %329 : vector<16x1xf32> to vector<16x64xf32>
    %334 = vector.broadcast %332 : vector<1x64xf32> to vector<16x64xf32>
    %335 = arith.mulf %333, %334 : vector<16x64xf32>
    %336 = arith.addf %324, %335 : vector<16x64xf32>
    %c2_i32 = arith.constant 2 : i32
    %337 = arith.addi %arg1, %c2_i32 : i32
    %c0_160 = arith.constant 0 : index
    %338 = arith.index_cast %337 : i32 to index
    %c0_161 = arith.constant 0 : index
    %c0_162 = arith.constant 0 : index
    %339 = vector.load %arg2[%c0_160, %338, %c0_161, %c0_162] : memref<1x76x19x1xbf16, #tpu.memory_space<vmem>>, vector<1x1x16x1xbf16>
    %340 = vector.shape_cast %339 : vector<1x1x16x1xbf16> to vector<16x1xbf16>
    %341 = arith.extf %340 : vector<16x1xbf16> to vector<16x1xf32>
    %c28 = arith.constant 28 : index
    %c0_163 = arith.constant 0 : index
    %c0_164 = arith.constant 0 : index
    %342 = vector.load %arg3[%c28, %c0_163, %c0_164] : memref<49x1x64xbf16, #tpu.memory_space<vmem>>, vector<1x1x64xbf16>
    %343 = vector.shape_cast %342 : vector<1x1x64xbf16> to vector<1x64xbf16>
    %344 = arith.extf %343 : vector<1x64xbf16> to vector<1x64xf32>
    %345 = vector.broadcast %341 : vector<16x1xf32> to vector<16x64xf32>
    %346 = vector.broadcast %344 : vector<1x64xf32> to vector<16x64xf32>
    %347 = arith.mulf %345, %346 : vector<16x64xf32>
    %348 = arith.addf %336, %347 : vector<16x64xf32>
    %c21_i32 = arith.constant 21 : i32
    %349 = arith.addi %arg1, %c21_i32 : i32
    %c0_165 = arith.constant 0 : index
    %350 = arith.index_cast %349 : i32 to index
    %c0_166 = arith.constant 0 : index
    %c0_167 = arith.constant 0 : index
    %351 = vector.load %arg2[%c0_165, %350, %c0_166, %c0_167] : memref<1x76x19x1xbf16, #tpu.memory_space<vmem>>, vector<1x1x16x1xbf16>
    %352 = vector.shape_cast %351 : vector<1x1x16x1xbf16> to vector<16x1xbf16>
    %353 = arith.extf %352 : vector<16x1xbf16> to vector<16x1xf32>
    %c29 = arith.constant 29 : index
    %c0_168 = arith.constant 0 : index
    %c0_169 = arith.constant 0 : index
    %354 = vector.load %arg3[%c29, %c0_168, %c0_169] : memref<49x1x64xbf16, #tpu.memory_space<vmem>>, vector<1x1x64xbf16>
    %355 = vector.shape_cast %354 : vector<1x1x64xbf16> to vector<1x64xbf16>
    %356 = arith.extf %355 : vector<1x64xbf16> to vector<1x64xf32>
    %357 = vector.broadcast %353 : vector<16x1xf32> to vector<16x64xf32>
    %358 = vector.broadcast %356 : vector<1x64xf32> to vector<16x64xf32>
    %359 = arith.mulf %357, %358 : vector<16x64xf32>
    %360 = arith.addf %348, %359 : vector<16x64xf32>
    %c2_i32_170 = arith.constant 2 : i32
    %361 = arith.addi %arg1, %c2_i32_170 : i32
    %c0_171 = arith.constant 0 : index
    %362 = arith.index_cast %361 : i32 to index
    %c1_172 = arith.constant 1 : index
    %c0_173 = arith.constant 0 : index
    %363 = vector.load %arg2[%c0_171, %362, %c1_172, %c0_173] : memref<1x76x19x1xbf16, #tpu.memory_space<vmem>>, vector<1x1x16x1xbf16>
    %364 = vector.shape_cast %363 : vector<1x1x16x1xbf16> to vector<16x1xbf16>
    %365 = arith.extf %364 : vector<16x1xbf16> to vector<16x1xf32>
    %c30 = arith.constant 30 : index
    %c0_174 = arith.constant 0 : index
    %c0_175 = arith.constant 0 : index
    %366 = vector.load %arg3[%c30, %c0_174, %c0_175] : memref<49x1x64xbf16, #tpu.memory_space<vmem>>, vector<1x1x64xbf16>
    %367 = vector.shape_cast %366 : vector<1x1x64xbf16> to vector<1x64xbf16>
    %368 = arith.extf %367 : vector<1x64xbf16> to vector<1x64xf32>
    %369 = vector.broadcast %365 : vector<16x1xf32> to vector<16x64xf32>
    %370 = vector.broadcast %368 : vector<1x64xf32> to vector<16x64xf32>
    %371 = arith.mulf %369, %370 : vector<16x64xf32>
    %372 = arith.addf %360, %371 : vector<16x64xf32>
    %c21_i32_176 = arith.constant 21 : i32
    %373 = arith.addi %arg1, %c21_i32_176 : i32
    %c0_177 = arith.constant 0 : index
    %374 = arith.index_cast %373 : i32 to index
    %c1_178 = arith.constant 1 : index
    %c0_179 = arith.constant 0 : index
    %375 = vector.load %arg2[%c0_177, %374, %c1_178, %c0_179] : memref<1x76x19x1xbf16, #tpu.memory_space<vmem>>, vector<1x1x16x1xbf16>
    %376 = vector.shape_cast %375 : vector<1x1x16x1xbf16> to vector<16x1xbf16>
    %377 = arith.extf %376 : vector<16x1xbf16> to vector<16x1xf32>
    %c31 = arith.constant 31 : index
    %c0_180 = arith.constant 0 : index
    %c0_181 = arith.constant 0 : index
    %378 = vector.load %arg3[%c31, %c0_180, %c0_181] : memref<49x1x64xbf16, #tpu.memory_space<vmem>>, vector<1x1x64xbf16>
    %379 = vector.shape_cast %378 : vector<1x1x64xbf16> to vector<1x64xbf16>
    %380 = arith.extf %379 : vector<1x64xbf16> to vector<1x64xf32>
    %381 = vector.broadcast %377 : vector<16x1xf32> to vector<16x64xf32>
    %382 = vector.broadcast %380 : vector<1x64xf32> to vector<16x64xf32>
    %383 = arith.mulf %381, %382 : vector<16x64xf32>
    %384 = arith.addf %372, %383 : vector<16x64xf32>
    %c2_i32_182 = arith.constant 2 : i32
    %385 = arith.addi %arg1, %c2_i32_182 : i32
    %c0_183 = arith.constant 0 : index
    %386 = arith.index_cast %385 : i32 to index
    %c2_184 = arith.constant 2 : index
    %c0_185 = arith.constant 0 : index
    %387 = vector.load %arg2[%c0_183, %386, %c2_184, %c0_185] : memref<1x76x19x1xbf16, #tpu.memory_space<vmem>>, vector<1x1x16x1xbf16>
    %388 = vector.shape_cast %387 : vector<1x1x16x1xbf16> to vector<16x1xbf16>
    %389 = arith.extf %388 : vector<16x1xbf16> to vector<16x1xf32>
    %c32 = arith.constant 32 : index
    %c0_186 = arith.constant 0 : index
    %c0_187 = arith.constant 0 : index
    %390 = vector.load %arg3[%c32, %c0_186, %c0_187] : memref<49x1x64xbf16, #tpu.memory_space<vmem>>, vector<1x1x64xbf16>
    %391 = vector.shape_cast %390 : vector<1x1x64xbf16> to vector<1x64xbf16>
    %392 = arith.extf %391 : vector<1x64xbf16> to vector<1x64xf32>
    %393 = vector.broadcast %389 : vector<16x1xf32> to vector<16x64xf32>
    %394 = vector.broadcast %392 : vector<1x64xf32> to vector<16x64xf32>
    %395 = arith.mulf %393, %394 : vector<16x64xf32>
    %396 = arith.addf %384, %395 : vector<16x64xf32>
    %c21_i32_188 = arith.constant 21 : i32
    %397 = arith.addi %arg1, %c21_i32_188 : i32
    %c0_189 = arith.constant 0 : index
    %398 = arith.index_cast %397 : i32 to index
    %c2_190 = arith.constant 2 : index
    %c0_191 = arith.constant 0 : index
    %399 = vector.load %arg2[%c0_189, %398, %c2_190, %c0_191] : memref<1x76x19x1xbf16, #tpu.memory_space<vmem>>, vector<1x1x16x1xbf16>
    %400 = vector.shape_cast %399 : vector<1x1x16x1xbf16> to vector<16x1xbf16>
    %401 = arith.extf %400 : vector<16x1xbf16> to vector<16x1xf32>
    %c33 = arith.constant 33 : index
    %c0_192 = arith.constant 0 : index
    %c0_193 = arith.constant 0 : index
    %402 = vector.load %arg3[%c33, %c0_192, %c0_193] : memref<49x1x64xbf16, #tpu.memory_space<vmem>>, vector<1x1x64xbf16>
    %403 = vector.shape_cast %402 : vector<1x1x64xbf16> to vector<1x64xbf16>
    %404 = arith.extf %403 : vector<1x64xbf16> to vector<1x64xf32>
    %405 = vector.broadcast %401 : vector<16x1xf32> to vector<16x64xf32>
    %406 = vector.broadcast %404 : vector<1x64xf32> to vector<16x64xf32>
    %407 = arith.mulf %405, %406 : vector<16x64xf32>
    %408 = arith.addf %396, %407 : vector<16x64xf32>
    %c2_i32_194 = arith.constant 2 : i32
    %409 = arith.addi %arg1, %c2_i32_194 : i32
    %c0_195 = arith.constant 0 : index
    %410 = arith.index_cast %409 : i32 to index
    %c3_196 = arith.constant 3 : index
    %c0_197 = arith.constant 0 : index
    %411 = vector.load %arg2[%c0_195, %410, %c3_196, %c0_197] : memref<1x76x19x1xbf16, #tpu.memory_space<vmem>>, vector<1x1x16x1xbf16>
    %412 = vector.shape_cast %411 : vector<1x1x16x1xbf16> to vector<16x1xbf16>
    %413 = arith.extf %412 : vector<16x1xbf16> to vector<16x1xf32>
    %c34 = arith.constant 34 : index
    %c0_198 = arith.constant 0 : index
    %c0_199 = arith.constant 0 : index
    %414 = vector.load %arg3[%c34, %c0_198, %c0_199] : memref<49x1x64xbf16, #tpu.memory_space<vmem>>, vector<1x1x64xbf16>
    %415 = vector.shape_cast %414 : vector<1x1x64xbf16> to vector<1x64xbf16>
    %416 = arith.extf %415 : vector<1x64xbf16> to vector<1x64xf32>
    %417 = vector.broadcast %413 : vector<16x1xf32> to vector<16x64xf32>
    %418 = vector.broadcast %416 : vector<1x64xf32> to vector<16x64xf32>
    %419 = arith.mulf %417, %418 : vector<16x64xf32>
    %420 = arith.addf %408, %419 : vector<16x64xf32>
    %c40_i32 = arith.constant 40 : i32
    %421 = arith.addi %arg1, %c40_i32 : i32
    %c0_200 = arith.constant 0 : index
    %422 = arith.index_cast %421 : i32 to index
    %c0_201 = arith.constant 0 : index
    %c0_202 = arith.constant 0 : index
    %423 = vector.load %arg2[%c0_200, %422, %c0_201, %c0_202] : memref<1x76x19x1xbf16, #tpu.memory_space<vmem>>, vector<1x1x16x1xbf16>
    %424 = vector.shape_cast %423 : vector<1x1x16x1xbf16> to vector<16x1xbf16>
    %425 = arith.extf %424 : vector<16x1xbf16> to vector<16x1xf32>
    %c35 = arith.constant 35 : index
    %c0_203 = arith.constant 0 : index
    %c0_204 = arith.constant 0 : index
    %426 = vector.load %arg3[%c35, %c0_203, %c0_204] : memref<49x1x64xbf16, #tpu.memory_space<vmem>>, vector<1x1x64xbf16>
    %427 = vector.shape_cast %426 : vector<1x1x64xbf16> to vector<1x64xbf16>
    %428 = arith.extf %427 : vector<1x64xbf16> to vector<1x64xf32>
    %429 = vector.broadcast %425 : vector<16x1xf32> to vector<16x64xf32>
    %430 = vector.broadcast %428 : vector<1x64xf32> to vector<16x64xf32>
    %431 = arith.mulf %429, %430 : vector<16x64xf32>
    %432 = arith.addf %420, %431 : vector<16x64xf32>
    %c59_i32 = arith.constant 59 : i32
    %433 = arith.addi %arg1, %c59_i32 : i32
    %c0_205 = arith.constant 0 : index
    %434 = arith.index_cast %433 : i32 to index
    %c0_206 = arith.constant 0 : index
    %c0_207 = arith.constant 0 : index
    %435 = vector.load %arg2[%c0_205, %434, %c0_206, %c0_207] : memref<1x76x19x1xbf16, #tpu.memory_space<vmem>>, vector<1x1x16x1xbf16>
    %436 = vector.shape_cast %435 : vector<1x1x16x1xbf16> to vector<16x1xbf16>
    %437 = arith.extf %436 : vector<16x1xbf16> to vector<16x1xf32>
    %c36 = arith.constant 36 : index
    %c0_208 = arith.constant 0 : index
    %c0_209 = arith.constant 0 : index
    %438 = vector.load %arg3[%c36, %c0_208, %c0_209] : memref<49x1x64xbf16, #tpu.memory_space<vmem>>, vector<1x1x64xbf16>
    %439 = vector.shape_cast %438 : vector<1x1x64xbf16> to vector<1x64xbf16>
    %440 = arith.extf %439 : vector<1x64xbf16> to vector<1x64xf32>
    %441 = vector.broadcast %437 : vector<16x1xf32> to vector<16x64xf32>
    %442 = vector.broadcast %440 : vector<1x64xf32> to vector<16x64xf32>
    %443 = arith.mulf %441, %442 : vector<16x64xf32>
    %444 = arith.addf %432, %443 : vector<16x64xf32>
    %c40_i32_210 = arith.constant 40 : i32
    %445 = arith.addi %arg1, %c40_i32_210 : i32
    %c0_211 = arith.constant 0 : index
    %446 = arith.index_cast %445 : i32 to index
    %c1_212 = arith.constant 1 : index
    %c0_213 = arith.constant 0 : index
    %447 = vector.load %arg2[%c0_211, %446, %c1_212, %c0_213] : memref<1x76x19x1xbf16, #tpu.memory_space<vmem>>, vector<1x1x16x1xbf16>
    %448 = vector.shape_cast %447 : vector<1x1x16x1xbf16> to vector<16x1xbf16>
    %449 = arith.extf %448 : vector<16x1xbf16> to vector<16x1xf32>
    %c37 = arith.constant 37 : index
    %c0_214 = arith.constant 0 : index
    %c0_215 = arith.constant 0 : index
    %450 = vector.load %arg3[%c37, %c0_214, %c0_215] : memref<49x1x64xbf16, #tpu.memory_space<vmem>>, vector<1x1x64xbf16>
    %451 = vector.shape_cast %450 : vector<1x1x64xbf16> to vector<1x64xbf16>
    %452 = arith.extf %451 : vector<1x64xbf16> to vector<1x64xf32>
    %453 = vector.broadcast %449 : vector<16x1xf32> to vector<16x64xf32>
    %454 = vector.broadcast %452 : vector<1x64xf32> to vector<16x64xf32>
    %455 = arith.mulf %453, %454 : vector<16x64xf32>
    %456 = arith.addf %444, %455 : vector<16x64xf32>
    %c59_i32_216 = arith.constant 59 : i32
    %457 = arith.addi %arg1, %c59_i32_216 : i32
    %c0_217 = arith.constant 0 : index
    %458 = arith.index_cast %457 : i32 to index
    %c1_218 = arith.constant 1 : index
    %c0_219 = arith.constant 0 : index
    %459 = vector.load %arg2[%c0_217, %458, %c1_218, %c0_219] : memref<1x76x19x1xbf16, #tpu.memory_space<vmem>>, vector<1x1x16x1xbf16>
    %460 = vector.shape_cast %459 : vector<1x1x16x1xbf16> to vector<16x1xbf16>
    %461 = arith.extf %460 : vector<16x1xbf16> to vector<16x1xf32>
    %c38 = arith.constant 38 : index
    %c0_220 = arith.constant 0 : index
    %c0_221 = arith.constant 0 : index
    %462 = vector.load %arg3[%c38, %c0_220, %c0_221] : memref<49x1x64xbf16, #tpu.memory_space<vmem>>, vector<1x1x64xbf16>
    %463 = vector.shape_cast %462 : vector<1x1x64xbf16> to vector<1x64xbf16>
    %464 = arith.extf %463 : vector<1x64xbf16> to vector<1x64xf32>
    %465 = vector.broadcast %461 : vector<16x1xf32> to vector<16x64xf32>
    %466 = vector.broadcast %464 : vector<1x64xf32> to vector<16x64xf32>
    %467 = arith.mulf %465, %466 : vector<16x64xf32>
    %468 = arith.addf %456, %467 : vector<16x64xf32>
    %c40_i32_222 = arith.constant 40 : i32
    %469 = arith.addi %arg1, %c40_i32_222 : i32
    %c0_223 = arith.constant 0 : index
    %470 = arith.index_cast %469 : i32 to index
    %c2_224 = arith.constant 2 : index
    %c0_225 = arith.constant 0 : index
    %471 = vector.load %arg2[%c0_223, %470, %c2_224, %c0_225] : memref<1x76x19x1xbf16, #tpu.memory_space<vmem>>, vector<1x1x16x1xbf16>
    %472 = vector.shape_cast %471 : vector<1x1x16x1xbf16> to vector<16x1xbf16>
    %473 = arith.extf %472 : vector<16x1xbf16> to vector<16x1xf32>
    %c39 = arith.constant 39 : index
    %c0_226 = arith.constant 0 : index
    %c0_227 = arith.constant 0 : index
    %474 = vector.load %arg3[%c39, %c0_226, %c0_227] : memref<49x1x64xbf16, #tpu.memory_space<vmem>>, vector<1x1x64xbf16>
    %475 = vector.shape_cast %474 : vector<1x1x64xbf16> to vector<1x64xbf16>
    %476 = arith.extf %475 : vector<1x64xbf16> to vector<1x64xf32>
    %477 = vector.broadcast %473 : vector<16x1xf32> to vector<16x64xf32>
    %478 = vector.broadcast %476 : vector<1x64xf32> to vector<16x64xf32>
    %479 = arith.mulf %477, %478 : vector<16x64xf32>
    %480 = arith.addf %468, %479 : vector<16x64xf32>
    %c59_i32_228 = arith.constant 59 : i32
    %481 = arith.addi %arg1, %c59_i32_228 : i32
    %c0_229 = arith.constant 0 : index
    %482 = arith.index_cast %481 : i32 to index
    %c2_230 = arith.constant 2 : index
    %c0_231 = arith.constant 0 : index
    %483 = vector.load %arg2[%c0_229, %482, %c2_230, %c0_231] : memref<1x76x19x1xbf16, #tpu.memory_space<vmem>>, vector<1x1x16x1xbf16>
    %484 = vector.shape_cast %483 : vector<1x1x16x1xbf16> to vector<16x1xbf16>
    %485 = arith.extf %484 : vector<16x1xbf16> to vector<16x1xf32>
    %c40 = arith.constant 40 : index
    %c0_232 = arith.constant 0 : index
    %c0_233 = arith.constant 0 : index
    %486 = vector.load %arg3[%c40, %c0_232, %c0_233] : memref<49x1x64xbf16, #tpu.memory_space<vmem>>, vector<1x1x64xbf16>
    %487 = vector.shape_cast %486 : vector<1x1x64xbf16> to vector<1x64xbf16>
    %488 = arith.extf %487 : vector<1x64xbf16> to vector<1x64xf32>
    %489 = vector.broadcast %485 : vector<16x1xf32> to vector<16x64xf32>
    %490 = vector.broadcast %488 : vector<1x64xf32> to vector<16x64xf32>
    %491 = arith.mulf %489, %490 : vector<16x64xf32>
    %492 = arith.addf %480, %491 : vector<16x64xf32>
    %c40_i32_234 = arith.constant 40 : i32
    %493 = arith.addi %arg1, %c40_i32_234 : i32
    %c0_235 = arith.constant 0 : index
    %494 = arith.index_cast %493 : i32 to index
    %c3_236 = arith.constant 3 : index
    %c0_237 = arith.constant 0 : index
    %495 = vector.load %arg2[%c0_235, %494, %c3_236, %c0_237] : memref<1x76x19x1xbf16, #tpu.memory_space<vmem>>, vector<1x1x16x1xbf16>
    %496 = vector.shape_cast %495 : vector<1x1x16x1xbf16> to vector<16x1xbf16>
    %497 = arith.extf %496 : vector<16x1xbf16> to vector<16x1xf32>
    %c41 = arith.constant 41 : index
    %c0_238 = arith.constant 0 : index
    %c0_239 = arith.constant 0 : index
    %498 = vector.load %arg3[%c41, %c0_238, %c0_239] : memref<49x1x64xbf16, #tpu.memory_space<vmem>>, vector<1x1x64xbf16>
    %499 = vector.shape_cast %498 : vector<1x1x64xbf16> to vector<1x64xbf16>
    %500 = arith.extf %499 : vector<1x64xbf16> to vector<1x64xf32>
    %501 = vector.broadcast %497 : vector<16x1xf32> to vector<16x64xf32>
    %502 = vector.broadcast %500 : vector<1x64xf32> to vector<16x64xf32>
    %503 = arith.mulf %501, %502 : vector<16x64xf32>
    %504 = arith.addf %492, %503 : vector<16x64xf32>
    %c3_i32 = arith.constant 3 : i32
    %505 = arith.addi %arg1, %c3_i32 : i32
    %c0_240 = arith.constant 0 : index
    %506 = arith.index_cast %505 : i32 to index
    %c0_241 = arith.constant 0 : index
    %c0_242 = arith.constant 0 : index
    %507 = vector.load %arg2[%c0_240, %506, %c0_241, %c0_242] : memref<1x76x19x1xbf16, #tpu.memory_space<vmem>>, vector<1x1x16x1xbf16>
    %508 = vector.shape_cast %507 : vector<1x1x16x1xbf16> to vector<16x1xbf16>
    %509 = arith.extf %508 : vector<16x1xbf16> to vector<16x1xf32>
    %c42 = arith.constant 42 : index
    %c0_243 = arith.constant 0 : index
    %c0_244 = arith.constant 0 : index
    %510 = vector.load %arg3[%c42, %c0_243, %c0_244] : memref<49x1x64xbf16, #tpu.memory_space<vmem>>, vector<1x1x64xbf16>
    %511 = vector.shape_cast %510 : vector<1x1x64xbf16> to vector<1x64xbf16>
    %512 = arith.extf %511 : vector<1x64xbf16> to vector<1x64xf32>
    %513 = vector.broadcast %509 : vector<16x1xf32> to vector<16x64xf32>
    %514 = vector.broadcast %512 : vector<1x64xf32> to vector<16x64xf32>
    %515 = arith.mulf %513, %514 : vector<16x64xf32>
    %516 = arith.addf %504, %515 : vector<16x64xf32>
    %c22_i32 = arith.constant 22 : i32
    %517 = arith.addi %arg1, %c22_i32 : i32
    %c0_245 = arith.constant 0 : index
    %518 = arith.index_cast %517 : i32 to index
    %c0_246 = arith.constant 0 : index
    %c0_247 = arith.constant 0 : index
    %519 = vector.load %arg2[%c0_245, %518, %c0_246, %c0_247] : memref<1x76x19x1xbf16, #tpu.memory_space<vmem>>, vector<1x1x16x1xbf16>
    %520 = vector.shape_cast %519 : vector<1x1x16x1xbf16> to vector<16x1xbf16>
    %521 = arith.extf %520 : vector<16x1xbf16> to vector<16x1xf32>
    %c43 = arith.constant 43 : index
    %c0_248 = arith.constant 0 : index
    %c0_249 = arith.constant 0 : index
    %522 = vector.load %arg3[%c43, %c0_248, %c0_249] : memref<49x1x64xbf16, #tpu.memory_space<vmem>>, vector<1x1x64xbf16>
    %523 = vector.shape_cast %522 : vector<1x1x64xbf16> to vector<1x64xbf16>
    %524 = arith.extf %523 : vector<1x64xbf16> to vector<1x64xf32>
    %525 = vector.broadcast %521 : vector<16x1xf32> to vector<16x64xf32>
    %526 = vector.broadcast %524 : vector<1x64xf32> to vector<16x64xf32>
    %527 = arith.mulf %525, %526 : vector<16x64xf32>
    %528 = arith.addf %516, %527 : vector<16x64xf32>
    %c3_i32_250 = arith.constant 3 : i32
    %529 = arith.addi %arg1, %c3_i32_250 : i32
    %c0_251 = arith.constant 0 : index
    %530 = arith.index_cast %529 : i32 to index
    %c1_252 = arith.constant 1 : index
    %c0_253 = arith.constant 0 : index
    %531 = vector.load %arg2[%c0_251, %530, %c1_252, %c0_253] : memref<1x76x19x1xbf16, #tpu.memory_space<vmem>>, vector<1x1x16x1xbf16>
    %532 = vector.shape_cast %531 : vector<1x1x16x1xbf16> to vector<16x1xbf16>
    %533 = arith.extf %532 : vector<16x1xbf16> to vector<16x1xf32>
    %c44 = arith.constant 44 : index
    %c0_254 = arith.constant 0 : index
    %c0_255 = arith.constant 0 : index
    %534 = vector.load %arg3[%c44, %c0_254, %c0_255] : memref<49x1x64xbf16, #tpu.memory_space<vmem>>, vector<1x1x64xbf16>
    %535 = vector.shape_cast %534 : vector<1x1x64xbf16> to vector<1x64xbf16>
    %536 = arith.extf %535 : vector<1x64xbf16> to vector<1x64xf32>
    %537 = vector.broadcast %533 : vector<16x1xf32> to vector<16x64xf32>
    %538 = vector.broadcast %536 : vector<1x64xf32> to vector<16x64xf32>
    %539 = arith.mulf %537, %538 : vector<16x64xf32>
    %540 = arith.addf %528, %539 : vector<16x64xf32>
    %c22_i32_256 = arith.constant 22 : i32
    %541 = arith.addi %arg1, %c22_i32_256 : i32
    %c0_257 = arith.constant 0 : index
    %542 = arith.index_cast %541 : i32 to index
    %c1_258 = arith.constant 1 : index
    %c0_259 = arith.constant 0 : index
    %543 = vector.load %arg2[%c0_257, %542, %c1_258, %c0_259] : memref<1x76x19x1xbf16, #tpu.memory_space<vmem>>, vector<1x1x16x1xbf16>
    %544 = vector.shape_cast %543 : vector<1x1x16x1xbf16> to vector<16x1xbf16>
    %545 = arith.extf %544 : vector<16x1xbf16> to vector<16x1xf32>
    %c45 = arith.constant 45 : index
    %c0_260 = arith.constant 0 : index
    %c0_261 = arith.constant 0 : index
    %546 = vector.load %arg3[%c45, %c0_260, %c0_261] : memref<49x1x64xbf16, #tpu.memory_space<vmem>>, vector<1x1x64xbf16>
    %547 = vector.shape_cast %546 : vector<1x1x64xbf16> to vector<1x64xbf16>
    %548 = arith.extf %547 : vector<1x64xbf16> to vector<1x64xf32>
    %549 = vector.broadcast %545 : vector<16x1xf32> to vector<16x64xf32>
    %550 = vector.broadcast %548 : vector<1x64xf32> to vector<16x64xf32>
    %551 = arith.mulf %549, %550 : vector<16x64xf32>
    %552 = arith.addf %540, %551 : vector<16x64xf32>
    %c3_i32_262 = arith.constant 3 : i32
    %553 = arith.addi %arg1, %c3_i32_262 : i32
    %c0_263 = arith.constant 0 : index
    %554 = arith.index_cast %553 : i32 to index
    %c2_264 = arith.constant 2 : index
    %c0_265 = arith.constant 0 : index
    %555 = vector.load %arg2[%c0_263, %554, %c2_264, %c0_265] : memref<1x76x19x1xbf16, #tpu.memory_space<vmem>>, vector<1x1x16x1xbf16>
    %556 = vector.shape_cast %555 : vector<1x1x16x1xbf16> to vector<16x1xbf16>
    %557 = arith.extf %556 : vector<16x1xbf16> to vector<16x1xf32>
    %c46 = arith.constant 46 : index
    %c0_266 = arith.constant 0 : index
    %c0_267 = arith.constant 0 : index
    %558 = vector.load %arg3[%c46, %c0_266, %c0_267] : memref<49x1x64xbf16, #tpu.memory_space<vmem>>, vector<1x1x64xbf16>
    %559 = vector.shape_cast %558 : vector<1x1x64xbf16> to vector<1x64xbf16>
    %560 = arith.extf %559 : vector<1x64xbf16> to vector<1x64xf32>
    %561 = vector.broadcast %557 : vector<16x1xf32> to vector<16x64xf32>
    %562 = vector.broadcast %560 : vector<1x64xf32> to vector<16x64xf32>
    %563 = arith.mulf %561, %562 : vector<16x64xf32>
    %564 = arith.addf %552, %563 : vector<16x64xf32>
    %c22_i32_268 = arith.constant 22 : i32
    %565 = arith.addi %arg1, %c22_i32_268 : i32
    %c0_269 = arith.constant 0 : index
    %566 = arith.index_cast %565 : i32 to index
    %c2_270 = arith.constant 2 : index
    %c0_271 = arith.constant 0 : index
    %567 = vector.load %arg2[%c0_269, %566, %c2_270, %c0_271] : memref<1x76x19x1xbf16, #tpu.memory_space<vmem>>, vector<1x1x16x1xbf16>
    %568 = vector.shape_cast %567 : vector<1x1x16x1xbf16> to vector<16x1xbf16>
    %569 = arith.extf %568 : vector<16x1xbf16> to vector<16x1xf32>
    %c47 = arith.constant 47 : index
    %c0_272 = arith.constant 0 : index
    %c0_273 = arith.constant 0 : index
    %570 = vector.load %arg3[%c47, %c0_272, %c0_273] : memref<49x1x64xbf16, #tpu.memory_space<vmem>>, vector<1x1x64xbf16>
    %571 = vector.shape_cast %570 : vector<1x1x64xbf16> to vector<1x64xbf16>
    %572 = arith.extf %571 : vector<1x64xbf16> to vector<1x64xf32>
    %573 = vector.broadcast %569 : vector<16x1xf32> to vector<16x64xf32>
    %574 = vector.broadcast %572 : vector<1x64xf32> to vector<16x64xf32>
    %575 = arith.mulf %573, %574 : vector<16x64xf32>
    %576 = arith.addf %564, %575 : vector<16x64xf32>
    %c3_i32_274 = arith.constant 3 : i32
    %577 = arith.addi %arg1, %c3_i32_274 : i32
    %c0_275 = arith.constant 0 : index
    %578 = arith.index_cast %577 : i32 to index
    %c3_276 = arith.constant 3 : index
    %c0_277 = arith.constant 0 : index
    %579 = vector.load %arg2[%c0_275, %578, %c3_276, %c0_277] : memref<1x76x19x1xbf16, #tpu.memory_space<vmem>>, vector<1x1x16x1xbf16>
    %580 = vector.shape_cast %579 : vector<1x1x16x1xbf16> to vector<16x1xbf16>
    %581 = arith.extf %580 : vector<16x1xbf16> to vector<16x1xf32>
    %c48 = arith.constant 48 : index
    %c0_278 = arith.constant 0 : index
    %c0_279 = arith.constant 0 : index
    %582 = vector.load %arg3[%c48, %c0_278, %c0_279] : memref<49x1x64xbf16, #tpu.memory_space<vmem>>, vector<1x1x64xbf16>
    %583 = vector.shape_cast %582 : vector<1x1x64xbf16> to vector<1x64xbf16>
    %584 = arith.extf %583 : vector<1x64xbf16> to vector<1x64xf32>
    %585 = vector.broadcast %581 : vector<16x1xf32> to vector<16x64xf32>
    %586 = vector.broadcast %584 : vector<1x64xf32> to vector<16x64xf32>
    %587 = arith.mulf %585, %586 : vector<16x64xf32>
    %588 = arith.addf %576, %587 : vector<16x64xf32>
    %c0_280 = arith.constant 0 : index
    %c0_281 = arith.constant 0 : index
    %589 = vector.load %arg4[%c0_280, %c0_281] : memref<1x64xf32, #tpu.memory_space<vmem>>, vector<1x64xf32>
    %590 = vector.broadcast %589 : vector<1x64xf32> to vector<16x64xf32>
    %591 = arith.mulf %588, %590 : vector<16x64xf32>
    %c0_282 = arith.constant 0 : index
    %c0_283 = arith.constant 0 : index
    %592 = vector.load %arg5[%c0_282, %c0_283] : memref<1x64xf32, #tpu.memory_space<vmem>>, vector<1x64xf32>
    %593 = vector.broadcast %592 : vector<1x64xf32> to vector<16x64xf32>
    %594 = arith.addf %591, %593 : vector<16x64xf32>
    %cst_284 = arith.constant 0.000000e+00 : f32
    %595 = vector.broadcast %cst_284 : f32 to vector<16x64xf32>
    %596 = arith.maximumf %594, %595 : vector<16x64xf32>
    %597 = arith.truncf %596 : vector<16x64xf32> to vector<16x64xbf16>
    %c0_285 = arith.constant 0 : index
    %c0_286 = arith.constant 0 : index
    %c0_287 = arith.constant 0 : index
    %c0_288 = arith.constant 0 : index
    %598 = vector.load %arg6[%c0_285, %c0_286, %c0_287, %c0_288] : memref<1x1x16x64xbf16, #tpu.memory_space<vmem>>, vector<1x1x16x64xbf16>
    %599 = vector.shape_cast %598 : vector<1x1x16x64xbf16> to vector<16x64xbf16>
    %600 = vector.shape_cast %597 : vector<16x64xbf16> to vector<1x1x16x64xbf16>
    tpu.vector_store %arg6[%c0_285, %c0_286, %c0_287, %c0_288], %600 {strides = array<i32>} : memref<1x1x16x64xbf16, #tpu.memory_space<vmem>>, vector<1x1x16x64xbf16>,
    return
  }
  func.func @transform_0(%arg0: i32, %arg1: i32) -> (i32, i32, i32, i32) {
    %c0_i32 = arith.constant 0 : i32
    %c0_i32_0 = arith.constant 0 : i32
    %c0_i32_1 = arith.constant 0 : i32
    %c0_i32_2 = arith.constant 0 : i32
    return %arg0, %c0_i32, %c0_i32_0, %c0_i32_1 : i32, i32, i32, i32
  }
  func.func @transform_1(%arg0: i32, %arg1: i32) -> (i32, i32, i32) {
    %c0_i32 = arith.constant 0 : i32
    %c0_i32_0 = arith.constant 0 : i32
    %c0_i32_1 = arith.constant 0 : i32
    %c0_i32_2 = arith.constant 0 : i32
    return %c0_i32, %c0_i32_0, %c0_i32_1 : i32, i32, i32
  }
  func.func @transform_2(%arg0: i32, %arg1: i32) -> (i32, i32) {
    %c0_i32 = arith.constant 0 : i32
    %c0_i32_0 = arith.constant 0 : i32
    %c0_i32_1 = arith.constant 0 : i32
    return %c0_i32, %c0_i32_0 : i32, i32
  }
  func.func @transform_3(%arg0: i32, %arg1: i32) -> (i32, i32) {
    %c0_i32 = arith.constant 0 : i32
    %c0_i32_0 = arith.constant 0 : i32
    %c0_i32_1 = arith.constant 0 : i32
    return %c0_i32, %c0_i32_0 : i32, i32
  }
  func.func @transform_4(%arg0: i32, %arg1: i32) -> (i32, i32, i32, i32) {
    %c0_i32 = arith.constant 0 : i32
    %c0_i32_0 = arith.constant 0 : i32
    %c0_i32_1 = arith.constant 0 : i32
    return %arg0, %arg1, %c0_i32, %c0_i32_0 : i32, i32, i32, i32
  }
}

</mosaic_0001>

<bundles_post_ra>
// kernel: tpu_custom_call.1
= control target key start
LH: loop header
LB: loop body
LE: loop exit
PB: predicated region body
PF: predicated region fallthrough
CT: control target
= control target key end

     0   :  { %9 = vsyncpa [#allocation3], 0  ;;  %s3388_s0 = inlined_call_operand.vmem [shape: bf16[2,76,19,1], index: 0, kind: input, shape index: {}]   ;;  %s3389_s1 = inlined_call_operand.vmem [shape: bf16[49,1,64], index: 1, kind: input, shape index: {}]   ;;  %s3390_s2 = inlined_call_operand.vmem [shape: f32[1,64], index: 2, kind: input, shape index: {}]   ;;  %s3391_s3 = inlined_call_operand.vmem [shape: f32[1,64], index: 3, kind: input, shape index: {}]   ;;  %s3392_s4 = inlined_call_operand.hbm [shape: bf16[2,16,16,64], index: 4, kind: output, shape index: {}]  }
   0x1   :  { %11 = vsyncpa [#allocation3 + $0x1], 0  ;;  %s2479_s15 = smov 0   ;;  %s2481_s16 = smov 0  }
   0x2   :  { %s2483_s17 = smov 0   ;;  %s2485_s18 = smov 0  }
   0x3   :  { %s2487_s19 = smov 0   ;;  %s2489_s20 = smov 0  }
   0x4   :  { %s2491_s21 = smov 0   ;;  %s2493_s22 = smov 0  }
   0x5 LB: > { %s1835_s23 = sadd.s32 4294967295, %s2449_s22   ;;  %s1836_s24 = sadd.s32 4294967294, %s2449_s22   ;;  %s2449_s22 = sphi %s2493_s22, %s17_s22   ;;  %s2445_s21 = sphi %s2491_s21, %s3402_s21   ;;  %s2441_s20 = sphi %s2489_s20, %s3401_s20   ;;  %s2437_s19 = sphi %s2487_s19, %s3400_s19   ;;  %s2433_s18 = sphi %s2485_s18, %s3399_s18   ;;  %s2429_s17 = sphi %s2483_s17, %s3398_s17   ;;  %s2425_s16 = sphi %s2481_s16, %s3397_s16   ;;  %s2421_s15 = sphi %s2479_s15, %s3396_s15  }
   0x6   : > { %s26_s25 = sadd.s32 1, %s2441_s20  ;;  %s29_s26 = sadd.s32 1, %s2445_s21 }
   0x7   : > { %p27_p0 = scmp.ge.s32.totalorder %s26_s25, 16  ;;  %p137_p1 = scmp.ne.s32.totalorder %s2429_s17, %s2425_s16 }
   0x8   : > { %p138_p2 = scmp.eq.s32.totalorder %s1835_s23, 31  ;;  %p143_p5 = scmp.ne.s32.totalorder %s2425_s16, %s2421_s15 }
   0x9   : > { %s3404_s25 = smov (%p27_p0, %s26_s25), 0  ;;  %s3406_s26 = smov (!%p27_p0, %s29_s26), %s2445_s21 }
   0xa   : > { %s123_s27 = ssub.s32 %s2441_s20, %s3404_s25  ;;  %p2530_p3 = por %p138_p2, %p137_p1 }
   0xb   : > { %p31_p4 = scmp.ge.s32.totalorder %s3406_s26, 2  ;;  %p144_p6 = scmp.eq.s32.totalorder %s1836_s24, 31 }
   0xc   : > { %p1839_p7 = scmp.ge.s32.totalorder %s2449_s22, 1  ;;  %p179_p9 = scmp.lt.s32.totalorder %s2449_s22, 33 }
   0xd   : > { %s3408_s26 = smov (%p31_p4, %s3406_s26), 0  ;;  %p2539_p8 = por %p144_p6, %p143_p5 }
   0xe   : > { %s122_s30 = ssub.s32 %s2445_s21, %s3408_s26  ;;  %s127_s5 = sadd.s32 1, %s2429_s17 }
   0xf   : > { %s124_s6 = sor.u32 %s123_s27, %s122_s30  ;;  %p180_p10 = pnand %p1839_p7, %p179_p9 }
  0x10   : > { %p125_p11 = scmp.eq.s32.totalorder %s124_s6, 0  ;;  %p205_p12 = scmp.lt.s32.totalorder (!%p180_p10), %s2437_s19, 1 }
  0x11   : > { %183 = sbr.rel (%p180_p10) target bundleno = 301 (0x12d), region = 36  ;;  %s1977_s11 = sshll.u32 (!%p180_p10), %s2437_s19, 5 }
  0x12   : > { %s2548_s7 = scalar_select %p125_p11, %s2429_s17, %s127_s5  }
  0x13   : > { %s1981_s9 = smul.u32 (!%p180_p10), 12, %s2433_s18  ;;  %s202_s12 = sand.u32 (!%p180_p10), 1, %s2425_s16  }
  0x14   : > { %s1840_s23 = sshll.u32 (!%p180_p10), %s202_s12, 3  ;;  %s2375_s24 = scalar_lea.hbm (!%p180_p10), %s3392_s4, 256 }
  0x16   : > { %v2451_v0 = vmov 0   ;;  %s206_s8 = scalar_select %p205_p12, %s2437_s19, 1  ;;  %vm291_vm0 = vcmask 1046528   ;;  %vm358_vm1 = vcmask 1045504   ;;  %vm411_vm2 = vcmask 1044480  }
  0x17   : > { %2147 = vset.pattern.permute.xlu2 %v2451_v0  ;;  %2136 = vset.pattern.permute.xlu1 %v2451_v0  ;;  %vm1697_vm3 = vcmask 519168  }
  0x18   : > { %2125 = vset.pattern.permute.xlu0 %v2451_v0  ;;  %s2050_s10 = smul.u32 912, %s206_s8 }
  0x1a   : > { %s209_s13 = scalar_lea.vmem %s3388_s0, %s2050_s10  ;;  %s1976_s10 = sshll.u32 %s2433_s18, 1 }
  0x1b   : > { %s2556_s14 = scalar_lea.vmem %s209_s13, %s1981_s9  ;;  %s1712_s18 = sadd.s32 %s1977_s11, %s1976_s10 }
  0x1c   : > { %v1848_v1 = vld [vmem:[%s2556_s14 + $0xe4] sm:$0xff]   ;;  %v1849_v2 = vld [vmem:[%s2556_s14 + $0xec] sm:$0x1]  ;;  %v341_v8 = vld [vmem:[%s2556_s14] sm:$0xe]  ;;  %s1978_s30 = sshll.u32 %s1712_s18, 2 }
  0x1d   : > { %v1987_v3 = vld [vmem:[%s2556_s14] sm:$0xff]   ;;  %v305_v4 = vunpack.c.h.bf16 %v1848_v1  ;;  %v306_v5 = vunpack.c.l.bf16 %v1849_v2  ;;  %v262_v10 = vld [vmem:[%s2556_s14 + $0x8] sm:$0x1]  ;;  %v342_v14 = vunpack.c.l.bf16 %v341_v8  ;;  %v304_v17 = vunpack.c.l.bf16 %v1848_v1  ;;  %v1859_v23 = vld [vmem:[%s2556_s14 + $0x2ac] sm:$0xff]   ;;  %s1714_s8 = scalar_lea.hbm %s3392_s4, %s1978_s30  ;;  %s204_s9 = scalar_lea.vmem [#allocation2], %s1840_s23 }
  0x1e   : > { %v1988_v6 = vunpack.c.l.bf16 %v1987_v3  ;;  %v1989_v7 = vunpack.c.h.bf16 %v1987_v3  ;;  %v1852_v9 = vld [vmem:[%s2556_s14 + $0xe4] sm:$0xe]  ;;  %v265_v16 = vunpack.c.l.bf16 %v262_v10  ;;  %v2039_v24 = vld [vmem:[%s2556_s14 + $0x1c8] sm:$0xff]   ;;  %v454_v26 = vunpack.c.h.bf16 %v1859_v23  ;;  %v1867_v34 = vld [vmem:[%s2556_s14 + $0x2b4] sm:$0x1]  ;;  %s1717_s10 = sshll.u32 %s1714_s8, 4  ;;  %s1718_s10 = int_to_ptr.hbm [resolvable:$true] %s1717_s10 }
  0x1f   : > { %v2148_v11 = vpack.i.bf16 %v306_v5, %v305_v4  ;;  %v1843_v13 = vld [vmem:[%s2556_s14 + $0xe4] sm:$0xff]   ;;  %v369_v15 = vunpack.c.l.bf16 %v1852_v9  ;;  %v1996_v27 = vunpack.c.l.bf16 %v2039_v24  ;;  %v1993_v28 = vunpack.c.h.bf16 %v2039_v24  ;;  %v1865_v36 = vld [vmem:[%s2556_s14 + $0x2ac] sm:$0xff]   ;;  %v1887_v59 = vld [vmem:[%s2556_s14 + $0xf8] sm:$0x1]  ;;  %s1701_s11 = scalar_lea.sflag [#allocation3], %s202_s12  ;;  %s2369_s18 = sshra.s32 %s1718_s10, 4  ;;  %s2370_s18 = int_to_ptr.hbm [resolvable:$true] %s2369_s18 }
  0x20   : > { %v2137_v12 = vpack.i.bf16 %v1989_v7, %v1988_v6  ;;  %v240_v18 = vunpack.c.l.bf16 %v1843_v13  ;;  %v241_v19 = vunpack.c.h.bf16 %v1843_v13  ;;  %v2142_v21 = vpack.i.bf16 %v304_v17, %v265_v16  ;;  %v394_v25 = vld [vmem:[%s2556_s14 + $0x8] sm:$0x3]  ;;  %v1863_v37 = vld [vmem:[%s2556_s14 + $0x1d0] sm:$0x1]  ;;  %v1871_v48 = vld [vmem:[%s2556_s14 + $0x2ac] sm:$0xe]  ;;  %p2376_p2 = scmp.lt.s32.totalorder %s2370_s18, %s3392_s4 }
  0x21   : > { %2149 = vperm.xlu2 %2147, %v2148_v11   ;;  %v2153_v20 = vpack.i.bf16 %v369_v15, %v342_v14  ;;  %v453_v29 = vunpack.c.l.bf16 %v1859_v23  ;;  %v395_v30 = vunpack.c.l.bf16 %v394_v25  ;;  %v2168_v31 = vpack.i.bf16 %v1996_v27, %v454_v26  ;;  %v1869_v35 = vld [vmem:[%s2556_s14 + $0x1c8] sm:$0xe]  ;;  %v2040_v46 = vld [vmem:[%s2556_s14 + $0xf0] sm:$0xff]   ;;  %v2042_v6 = vld [vmem:[%s2556_s14 + $0x2b8] sm:$0xff]   ;;  %s2371_s19 = scalar_lea.hbm %s2370_s18, 8 }
  0x22   : > { %2138 = vperm.xlu1 %2136, %v2137_v12   ;;  %2127 = vperm.xlu0 %2125, %v2137_v12   ;;  %v2131_v22 = vpack.i.bf16 %v241_v19, %v240_v18  ;;  %v518_v38 = vunpack.c.l.bf16 %v1867_v34  ;;  %v554_v39 = vunpack.c.l.bf16 %v1869_v35  ;;  %v516_v40 = vunpack.c.l.bf16 %v1865_v36  ;;  %v1875_v47 = vld [vmem:[%s2556_s14 + $0xc] sm:$0xff]   ;;  %v1883_v60 = vld [vmem:[%s2556_s14 + $0x14] sm:$0x1]  ;;  %p2372_p13 = scmp.ne.s32.totalorder %s2370_s18, %s2371_s19  ;;  %p2377_p4 = scmp.lt.s32.totalorder %s2375_s24, %s2371_s19 }
  0x23   : > { %v2163_v32 = vpack.i.bf16 %v453_v29, %v1993_v28  ;;  %v2158_v33 = vpack.i.bf16 %v1996_v27, %v395_v30  ;;  %v517_v41 = vunpack.c.h.bf16 %v1865_v36  ;;  %v478_v42 = vunpack.c.l.bf16 %v1863_v37  ;;  %v1873_v49 = vld [vmem:[%s2556_s14 + $0x1d0] sm:$0x3]  ;;  %v1896_v5 = vld [vmem:[%s2556_s14 + $0x1d4] sm:$0xff]   ;;  %v1889_v8 = vld [vmem:[%s2556_s14 + $0xc] sm:$0xe] }
  0x24   : > { %v2183_v43 = vpack.i.bf16 %v554_v39, %v518_v38  ;;  %v2000_v50 = vunpack.c.l.bf16 %v2040_v46  ;;  %v2001_v51 = vunpack.c.h.bf16 %v2040_v46  ;;  %v637_v52 = vunpack.c.l.bf16 %v1875_v47  ;;  %v1881_v61 = vld [vmem:[%s2556_s14 + $0xc] sm:$0xff]   ;;  %v1893_v7 = vld [vmem:[%s2556_s14 + $0x14] sm:$0x3]  ;;  %v1911_v29 = vld [vmem:[%s2556_s14 + $0x2b8] sm:$0xe]  ;;  %p2373_p0 = pnand %p2372_p13, %p2530_p3  ;;  %p2378_p5 = por %p2377_p4, %p2376_p2 }
  0x25   : > { %v2178_v44 = vpack.i.bf16 %v517_v41, %v516_v40  ;;  %v2173_v45 = vpack.i.bf16 %v478_v42, %v1993_v28  ;;  %v638_v53 = vunpack.c.h.bf16 %v1875_v47  ;;  %v580_v54 = vunpack.c.l.bf16 %v1871_v48  ;;  %v1891_v9 = vld [vmem:[%s2556_s14 + $0xf0] sm:$0xe]  ;;  %v1902_v19 = vld [vmem:[%s2556_s14 + $0x1d4] sm:$0xff]   ;;  %v1913_v30 = vld [vmem:[%s2556_s14 + $0x1dc] sm:$0x3] }
  0x26   : > { %v606_v55 = vunpack.c.l.bf16 %v1873_v49  ;;  %v2198_v56 = vpack.i.bf16 %v2001_v51, %v2000_v50  ;;  %v728_v62 = vunpack.c.l.bf16 %v1887_v59  ;;  %v688_v63 = vunpack.c.l.bf16 %v1883_v60  ;;  %v2044_v28 = vld [vmem:[%s2556_s14 + $0x18] sm:$0xff]   ;;  %v1923_v42 = vld [vmem:[%s2556_s14 + $0x20] sm:$0x1]  ;;  %p2374_p1 = pneg %p2373_p0 }
  0x27   : > { %v2193_v57 = vpack.i.bf16 %v638_v53, %v637_v52  ;;  %v686_v0 = vunpack.c.l.bf16 %v1881_v61  ;;  %v687_v1 = vunpack.c.h.bf16 %v1881_v61  ;;  %v848_v10 = vunpack.c.h.bf16 %v1896_v5  ;;  %v2046_v52 = vld [vmem:[%s2556_s14 + $0x1e0] sm:$0xff]   ;;  %v1929_v53 = vld [vmem:[%s2556_s14 + $0x18] sm:$0xe] }
  0x28   : > { %v2188_v58 = vpack.i.bf16 %v606_v55, %v580_v54  ;;  %v2213_v2 = vpack.i.bf16 %v728_v62, %v2001_v51  ;;  %v2208_v3 = vpack.i.bf16 %v2000_v50, %v688_v63  ;;  %v2008_v11 = vunpack.c.l.bf16 %v2042_v6  ;;  %v1933_v50 = vld [vmem:[%s2556_s14 + $0x20] sm:$0x3]  ;;  %v1931_v54 = vld [vmem:[%s2556_s14 + $0xfc] sm:$0xe]  ;;  %v1927_v55 = vld [vmem:[%s2556_s14 + $0x104] sm:$0x1]  ;;  %p2379_p6 = pnand %p2378_p5, %p2374_p1 }
  0x29   : > { %2154 = vperm.xlu2 %2147, %v2153_v20   ;;  %v2203_v4 = vpack.i.bf16 %v687_v1, %v686_v0  ;;  %v816_v12 = vunpack.c.l.bf16 %v1893_v7  ;;  %v847_v13 = vunpack.c.l.bf16 %v1896_v5  ;;  %v764_v14 = vunpack.c.l.bf16 %v1889_v8  ;;  %v1903_v20 = vld [vmem:[%s2556_s14 + $0x1dc] sm:$0x1]  ;;  %v1943_v1 = vld [vmem:[%s2556_s14 + $0x1e8] sm:$0x1] }
  0x2a   : > { %2143 = vperm.xlu1 %2136, %v2142_v21   ;;  %2132 = vperm.xlu0 %2125, %v2131_v22   ;;  %v790_v15 = vunpack.c.l.bf16 %v1891_v9  ;;  %v2228_v16 = vpack.i.bf16 %v2008_v11, %v848_v10  ;;  %v2013_v21 = vunpack.c.h.bf16 %v2042_v6  ;;  %v897_v22 = vunpack.c.h.bf16 %v1902_v19  ;;  %v1951_v9 = vld [vmem:[%s2556_s14 + $0x2c4] sm:$0xe] }
  0x2b   : > { %v2223_v17 = vpack.i.bf16 %v847_v13, %v816_v12  ;;  %v898_v23 = vunpack.c.l.bf16 %v1903_v20  ;;  %v896_v24 = vunpack.c.l.bf16 %v1902_v19  ;;  %v2017_v34 = vunpack.c.h.bf16 %v2044_v28  ;;  %v1947_v12 = vld [vmem:[%s2556_s14 + $0x2cc] sm:$0x1]  ;;  %v1949_v13 = vld [vmem:[%s2556_s14 + $0x1e0] sm:$0xe] }
  0x2c   : > { %v2218_v18 = vpack.i.bf16 %v790_v15, %v764_v14  ;;  %v2243_v25 = vpack.i.bf16 %v2013_v21, %v2008_v11  ;;  %v1000_v35 = vunpack.c.l.bf16 %v1911_v29  ;;  %v1026_v36 = vunpack.c.l.bf16 %v1913_v30  ;;  %v1953_v11 = vld [vmem:[%s2556_s14 + $0x1e8] sm:$0x3]  ;;  %v1850_v29 = vld [vmem:[%s3389_s1 + $0x3] sm:$0x1] }
  0x2d   : > { %v2238_v26 = vpack.i.bf16 %v898_v23, %v897_v22  ;;  %v2233_v27 = vpack.i.bf16 %v896_v24, %v2013_v21  ;;  %v1210_v59 = vunpack.c.l.bf16 %v1931_v54  ;;  %v1148_v61 = vunpack.c.l.bf16 %v1927_v55  ;;  %v1945_v14 = vld [vmem:[%s2556_s14 + $0x2c4] sm:$0xff]   ;;  %v1967_v55 = vld [vmem:[%s2556_s14 + $0x110] sm:$0x1] }
  0x2e   : > { %v2253_v40 = vpack.i.bf16 %v1026_v36, %v1000_v35  ;;  %v1420_v15 = vunpack.c.l.bf16 %v1951_v9  ;;  %v1356_v19 = vunpack.c.l.bf16 %v1945_v14  ;;  %v1357_v20 = vunpack.c.h.bf16 %v1945_v14  ;;  %v1962_v24 = vld [vmem:[%s2556_s14 + $0x24] sm:$0xff]   ;;  %v217_v9 = vld [vmem:[%s3389_s1] sm:$0x1] }
  0x2f   : > { %v1527_v30 = vunpack.c.h.bf16 %v1962_v24  ;;  %v1526_v35 = vunpack.c.l.bf16 %v1962_v24  ;;  %v218_v24 = vunpack.c.l.bf16 %v217_v9 }
  0x31   : > { %2169 = vperm.xlu2 %2147, %v2168_v31   ;;  %v1907_v31 = vld [vmem:[%s2556_s14 + $0x2c0] sm:$0x1] }
  0x32   : > { %2164 = vperm.xlu1 %2136, %v2163_v32   ;;  %2159 = vperm.xlu0 %2125, %v2158_v33   ;;  %v1909_v32 = vld [vmem:[%s2556_s14 + $0x1d4] sm:$0xe]  ;;  %v2016_v33 = vunpack.c.l.bf16 %v2044_v28  ;;  %v938_v37 = vunpack.c.l.bf16 %v1907_v31  ;;  %v1955_v28 = vld [vmem:[%s2556_s14 + $0x24] sm:$0xff]  }
  0x33   : > { %v974_v38 = vunpack.c.l.bf16 %v1909_v32  ;;  %v1853_v32 = vld [vmem:[%s3389_s1 + $0x5] sm:$0x1]  ;;  %v1477_v36 = vunpack.c.l.bf16 %v1955_v28 }
  0x34   : > { %v2258_v39 = vpack.i.bf16 %v2017_v34, %v2016_v33  ;;  %v1851_v33 = vld [vmem:[%s3389_s1 + $0x4] sm:$0x1] }
  0x35   : > { %v2248_v41 = vpack.i.bf16 %v974_v38, %v938_v37  ;;  %v1478_v37 = vunpack.c.h.bf16 %v1955_v28  ;;  %v1854_v38 = vld [vmem:[%s3389_s1 + $0x6] sm:$0x1] }
  0x39   : > { %2184 = vperm.xlu2 %2147, %v2183_v43   ;;  %v1925_v43 = vld [vmem:[%s2556_s14 + $0xfc] sm:$0xff]  }
  0x3a   : > { %2179 = vperm.xlu1 %2136, %v2178_v44   ;;  %2174 = vperm.xlu0 %2125, %v2173_v45   ;;  %v1918_v44 = vld [vmem:[%s2556_s14 + $0xfc] sm:$0xff]   ;;  %v1108_v45 = vunpack.c.l.bf16 %v1923_v42  ;;  %v1146_v46 = vunpack.c.l.bf16 %v1925_v43  ;;  %v1084_v48 = vunpack.c.h.bf16 %v1925_v43  ;;  %v1864_v42 = vld [vmem:[%s3389_s1 + $0x9] sm:$0x1]  ;;  %v1969_v43 = vld [vmem:[%s2556_s14 + $0x24] sm:$0xe] }
  0x3b   : > { %v1083_v47 = vunpack.c.l.bf16 %v1918_v44  ;;  %v1147_v60 = vunpack.c.h.bf16 %v1918_v44  ;;  %v1971_v44 = vld [vmem:[%s2556_s14 + $0x108] sm:$0xe] }
  0x3c   : > { %v2273_v49 = vpack.i.bf16 %v1146_v46, %v1108_v45  ;;  %v372_v45 = vunpack.c.l.bf16 %v1853_v32  ;;  %v345_v46 = vunpack.c.l.bf16 %v1851_v33  ;;  %v1630_v54 = vunpack.c.l.bf16 %v1971_v44  ;;  %v1973_v33 = vld [vmem:[%s2556_s14 + $0x2c] sm:$0x3] }
  0x3d   : > { %v2263_v51 = vpack.i.bf16 %v1084_v48, %v1083_v47  ;;  %v2278_v0 = vpack.i.bf16 %v1148_v61, %v1147_v60  ;;  %v398_v47 = vunpack.c.l.bf16 %v1854_v38  ;;  %v1892_v38 = vld [vmem:[%s3389_s1 + $0x13] sm:$0x1] }
  0x3e   : > { %v378_v60 = vperm.slane %v372_v45, 0  ;;  %v1656_v45 = vunpack.c.l.bf16 %v1973_v33 }
  0x41   : > { %2199 = vperm.xlu2 %2147, %v2198_v56   ;;  %v1236_v56 = vunpack.c.l.bf16 %v1933_v50  ;;  %v2323_v50 = vpack.i.bf16 %v1478_v37, %v1477_v36  ;;  %v1888_v37 = vld [vmem:[%s3389_s1 + $0x11] sm:$0x1] }
  0x42   : > { %2194 = vperm.xlu1 %2136, %v2193_v57   ;;  %2189 = vperm.xlu0 %2125, %v2188_v58   ;;  %v2024_v57 = vunpack.c.l.bf16 %v2046_v52  ;;  %v1184_v58 = vunpack.c.l.bf16 %v1929_v53  ;;  %v1604_v53 = vunpack.c.l.bf16 %v1969_v43  ;;  %v1857_v43 = vld [vmem:[%s3389_s1 + $0x7] sm:$0x1] }
  0x44   : > { %v2288_v62 = vpack.i.bf16 %v2024_v57, %v1236_v56  ;;  %v2283_v63 = vpack.i.bf16 %v1210_v59, %v1184_v58  ;;  %v1868_v59 = vld [vmem:[%s3389_s1 + $0xa] sm:$0x1] }
  0x49   : > { %2214 = vperm.xlu2 %2147, %v2213_v2   ;;  %v1939_v2 = vld [vmem:[%s2556_s14 + $0x2c4] sm:$0xff]  }
  0x4a   : > { %2209 = vperm.xlu1 %2136, %v2208_v3   ;;  %2204 = vperm.xlu0 %2125, %v2203_v4   ;;  %v2029_v3 = vunpack.c.h.bf16 %v2046_v52  ;;  %v1318_v4 = vunpack.c.l.bf16 %v1943_v1  ;;  %v1294_v5 = vunpack.c.h.bf16 %v1939_v2  ;;  %v1293_v6 = vunpack.c.l.bf16 %v1939_v2 }
  0x4b   : > { %v481_v52 = vunpack.c.l.bf16 %v1864_v42  ;;  %v2654_v1 = vperm.slane %v398_v47, 0  ;;  %v1568_v2 = vunpack.c.l.bf16 %v1967_v55  ;;  %v2702_v42 = vperm.slane %v218_v24, 0  ;;  %v1900_v55 = vld [vmem:[%s3389_s1 + $0x16] sm:$0x1] }
  0x4c   : > { %v2303_v7 = vpack.i.bf16 %v1318_v4, %v2029_v3  ;;  %v2298_v8 = vpack.i.bf16 %v2024_v57, %v1294_v5  ;;  %v2293_v10 = vpack.i.bf16 %v1293_v6, %v2029_v3  ;;  %v1874_v3 = vld [vmem:[%s3389_s1 + $0xd] sm:$0x1]  ;;  %v1846_v4 = vld [vmem:[%s3389_s1 + $0x2] sm:$0x1]  ;;  %v877_v9 = vunpack.c.l.bf16 %v1900_v55 }
  0x4d   : > { %v2664_v6 = vperm.slane %v481_v52, 0  ;;  %v731_v52 = vunpack.c.l.bf16 %v1888_v37 }
  0x51   : > { %2229 = vperm.xlu2 %2147, %v2228_v16   ;;  %v1446_v16 = vunpack.c.l.bf16 %v1953_v11 }
  0x52   : > { %2224 = vperm.xlu1 %2136, %v2223_v17   ;;  %2219 = vperm.xlu0 %2125, %v2218_v18   ;;  %v1358_v17 = vunpack.c.l.bf16 %v1947_v12  ;;  %v1394_v18 = vunpack.c.l.bf16 %v1949_v13 }
  0x53   : > { %v2318_v22 = vpack.i.bf16 %v1446_v16, %v1420_v15  ;;  %v1880_v15 = vld [vmem:[%s3389_s1 + $0xf] sm:$0x1]  ;;  %v1845_v16 = vld [vmem:[%s3389_s1 + $0x1] sm:$0x1] }
  0x54   : > { %v2313_v23 = vpack.i.bf16 %v1394_v18, %v1358_v17  ;;  %v244_v28 = vunpack.c.l.bf16 %v1845_v16 }
  0x56   : > { %v2712_v47 = vperm.slane %v244_v28, 0 }
  0x59   : > { %2244 = vperm.xlu2 %2147, %v2243_v25   ;;  %v1963_v25 = vld [vmem:[%s2556_s14 + $0x2c] sm:$0x1] }
  0x5a   : > { %2239 = vperm.xlu1 %2136, %v2238_v26   ;;  %2234 = vperm.xlu0 %2125, %v2233_v27   ;;  %v2308_v26 = vpack.i.bf16 %v1357_v20, %v1356_v19  ;;  %v2611_v27 = vld [vmem:[%s2556_s14 + $0x108] sm:$0xff]   ;;  %v1528_v31 = vunpack.c.l.bf16 %v1963_v25  ;;  %v609_v19 = vunpack.c.l.bf16 %v1874_v3  ;;  %v268_v20 = vunpack.c.l.bf16 %v1846_v4  ;;  %s1715_s14 = sshll.u32 %s204_s9, 4  ;;  %s1716_s14 = int_to_ptr.vmem [resolvable:$true] %s1715_s14 }
  0x5b   : > { %v2032_v34 = vunpack.c.l.bf16 %v2611_v27  ;;  %v2037_v61 = vunpack.c.h.bf16 %v2611_v27  ;;  %v667_v27 = vunpack.c.l.bf16 %v1880_v15 }
  0x5c   : > { %v2333_v48 = vpack.i.bf16 %v1528_v31, %v1527_v30  ;;  %v2693_v36 = vperm.slane %v268_v20, 0 }
  0x5d   : > { %v2338_v18 = vpack.i.bf16 %v2032_v34, %v2037_v61 }
  0x61   : > { %2259 = vperm.xlu2 %2147, %v2258_v39  }
  0x62   : > { %2254 = vperm.xlu1 %2136, %v2253_v40   ;;  %2249 = vperm.xlu0 %2125, %v2248_v41   ;;  %v309_v40 = vunpack.c.l.bf16 %v1850_v29 }
  0x64   : > { %v2638_v56 = vperm.slane %v309_v40, 0 }
  0x69   : > { %2274 = vperm.xlu2 %2147, %v2273_v49   ;;  %v2328_v49 = vpack.i.bf16 %v1526_v35, %v2032_v34  ;;  %v2691_v35 = vperm.slane %v609_v19, 0 }
  0x6a   : > { %2269 = vperm.xlu1 %2136, %v2258_v39   ;;  %2264 = vperm.xlu0 %2125, %v2263_v51   ;;  %v1860_v39 = vld [vmem:[%s3389_s1 + $0x8] sm:$0x1] }
  0x6b   : > { %v457_v51 = vunpack.c.l.bf16 %v1860_v39 }
  0x6d   : > { %v2662_v5 = vperm.slane %v457_v51, 0 }
  0x71   : > { %2289 = vperm.xlu2 %2147, %v2288_v62   ;;  %v1870_v62 = vld [vmem:[%s3389_s1 + $0xb] sm:$0x1] }
  0x72   : > { %2284 = vperm.xlu1 %2136, %v2283_v63   ;;  %2279 = vperm.xlu0 %2125, %v2278_v0   ;;  %v1872_v63 = vld [vmem:[%s3389_s1 + $0xc] sm:$0x1]  ;;  %v2652_v0 = vperm.slane %v345_v46, 0  ;;  %v557_v13 = vunpack.c.l.bf16 %v1870_v62  ;;  %v2710_v46 = vperm.slane %v667_v27, 0  ;;  %v2766_v27 = vperm.slane %v877_v9, 0 }
  0x73   : > { %v583_v14 = vunpack.c.l.bf16 %v1872_v63 }
  0x74   : > { %v2686_v31 = vperm.slane %v557_v13, 0 }
  0x75   : > { %v2688_v32 = vperm.slane %v583_v14, 0  ;;  %v2740_v14 = vperm.slane %v731_v52, 0 }
  0x79   : > { %2304 = vperm.xlu2 %2147, %v2303_v7   ;;  %v2348_v7 = vpack.i.bf16 %v1630_v54, %v1604_v53  ;;  %v793_v53 = vunpack.c.l.bf16 %v1892_v38  ;;  %v1897_v54 = vld [vmem:[%s3389_s1 + $0x15] sm:$0x1] }
  0x7a   : > { %2299 = vperm.xlu1 %2136, %v2298_v8   ;;  %2294 = vperm.xlu0 %2125, %v2293_v10   ;;  %v521_v8 = vunpack.c.l.bf16 %v1868_v59 }
  0x7b   : > { %v2606_v21 = vpop.permute.xlu2 %2149  ;;  %v2742_v15 = vperm.slane %v793_v53, 0 }
  0x7c   : > { %v2152_v57 = vunpack.i.h.bf16 %v2606_v21  ;;  %v2151_v58 = vunpack.i.l.bf16 %v2606_v21 }
  0x7e   : > { %v328_v10 = vmul.f32 %v2152_v57, %v2638_v56  ;;  %v2671_v11 = vmul.f32 %v2151_v58, %v2638_v56  ;;  %v381_v21 = vmul.f32 %v2152_v57, %v378_v60 }
  0x80   : > { %v335_v29 = vrot.slane %v328_v10, 1  ;;  %v333_v30 = vrot.slane %v2671_v11, 1  ;;  %v388_v39 = vrot.slane %v381_v21, 2 }
  0x81   : > { %2319 = vperm.xlu2 %2147, %v2318_v22   ;;  %v380_v22 = vmul.f32 %v2151_v58, %v378_v60 }
  0x82   : > { %2314 = vperm.xlu1 %2136, %v2313_v23   ;;  %2309 = vperm.xlu0 %2125, %v2308_v26   ;;  %v2343_v23 = vpack.i.bf16 %v1568_v2, %v2037_v61  ;;  %v2683_v26 = vperm.slane %v521_v8, 0  ;;  %v431_v61 = vunpack.c.l.bf16 %v1857_v43  ;;  %v851_v8 = vunpack.c.l.bf16 %v1897_v54 }
  0x83   : > { %v2630_v41 = vpop.permute.xlu2 %2154  ;;  %v386_v40 = vrot.slane %v380_v22, 2 }
  0x84   : > { %v2157_v17 = vunpack.i.h.bf16 %v2630_v41  ;;  %v2156_v25 = vunpack.i.l.bf16 %v2630_v41 }
  0x85   : > { %v2729_v62 = vsel %vm358_vm1, %v386_v40, %v388_v39 }
  0x86   : > { %v379_v34 = vmul.f32 %v2157_v17, %v378_v60  ;;  %v2708_v44 = vmul.f32 %v2156_v25, %v2652_v0 }
  0x88   : > { %v385_v57 = vrot.slane %v379_v34, 2  ;;  %v359_v4 = vrot.slane %v2708_v44, 2 }
  0x89   : > { %2334 = vperm.xlu2 %2147, %v2333_v48   ;;  %v2717_v48 = vsel %vm291_vm0, %v333_v30, %v335_v29 }
  0x8a   : > { %2329 = vperm.xlu1 %2136, %v2328_v49   ;;  %2324 = vperm.xlu0 %2125, %v2323_v50   ;;  %v2720_v49 = vmul.f32 %v2156_v25, %v2654_v1  ;;  %v2745_v16 = vsel %vm358_vm1, %v385_v57, %v386_v40  ;;  %v2764_v25 = vperm.slane %v851_v8, 0 }
  0x8b   : > { %v2673_v12 = vpop.permute.xlu2 %2169 }
  0x8c   : > { %v2172_v41 = vunpack.i.h.bf16 %v2673_v12  ;;  %v2171_v2 = vunpack.i.l.bf16 %v2673_v12  ;;  %v412_v10 = vrot.slane %v2720_v49, 3 }
  0x8e   : > { %v2732_v63 = vmul.f32 %v2172_v41, %v2664_v6  ;;  %v2757_v20 = vmul.f32 %v2171_v2, %v2662_v5 }
  0x90   : > { %v504_v19 = vrot.slane %v2732_v63, 1 }
  0x91   : > { %2349 = vperm.xlu2 %2147, %v2348_v7  }
  0x92   : > { %2344 = vperm.xlu1 %2136, %v2343_v23   ;;  %2339 = vperm.xlu0 %2125, %v2338_v18   ;;  %v2753_v18 = vperm.slane %v431_v61, 0 }
  0x93   : > { %v2185_v50 = vpop.permute.xlu2 %2184 }
  0x94   : > { %v2139_v51 = vpop.permute.xlu1 %2138  ;;  %v2187_v58 = vunpack.i.h.bf16 %v2185_v50  ;;  %v2186_v59 = vunpack.i.l.bf16 %v2185_v50  ;;  %v2128_v60 = vpop.permute.xlu0 %2127 }
  0x95   : > { %v2141_v3 = vunpack.i.h.bf16 %v2139_v51  ;;  %v2140_v7 = vunpack.i.l.bf16 %v2139_v51  ;;  %v2130_v24 = vunpack.i.h.bf16 %v2128_v60  ;;  %v2129_v34 = vunpack.i.l.bf16 %v2128_v60  ;;  %v1912_v60 = vld [vmem:[%s3389_s1 + $0x1a] sm:$0x1] }
  0x96   : > { %v2738_v13 = vmul.f32 %v2187_v58, %v2686_v31  ;;  %v2748_v12 = vmul.f32 %v2187_v58, %v2691_v35  ;;  %v2751_v17 = vmul.f32 %v2186_v59, %v2683_v26  ;;  %v2760_v21 = vmul.f32 %v2186_v59, %v2688_v32  ;;  %v1908_v59 = vld [vmem:[%s3389_s1 + $0x18] sm:$0x1] }
  0x97   : > { %v286_v22 = vmul.f32 %v2141_v3, %v2693_v36  ;;  %v285_v23 = vmul.f32 %v2140_v7, %v2693_v36  ;;  %v353_v29 = vmul.f32 %v2141_v3, %v2652_v0  ;;  %v2771_v33 = vmul.f32 %v2141_v3, %v2654_v1 }
  0x98   : > { %v570_v28 = vrot.slane %v2738_v13, 2  ;;  %v622_v39 = vrot.slane %v2748_v12, 3  ;;  %v547_v40 = vrot.slane %v2751_v17, 1  ;;  %v599_v50 = vrot.slane %v2760_v21, 2 }
  0x99   : > { %v293_v51 = vrot.slane %v286_v22, 1  ;;  %v292_v54 = vrot.slane %v285_v23, 1  ;;  %v231_v55 = vmul.f32 %v2130_v24, %v2702_v42  ;;  %v230_v61 = vmul.f32 %v2129_v34, %v2702_v42  ;;  %v1884_v34 = vld [vmem:[%s3389_s1 + $0x10] sm:$0x1] }
  0x9a   : > { %1662 = vperm.xlu0 %2125, %v1656_v45   ;;  %v360_v8 = vrot.slane %v353_v29, 2  ;;  %v941_v24 = vunpack.c.l.bf16 %v1908_v59 }
  0x9b   : > { %v2200_v37 = vpop.permute.xlu2 %2199  ;;  %v294_v29 = vsel %vm291_vm0, %v292_v54, %v293_v51 }
  0x9c   : > { %v2144_v38 = vpop.permute.xlu1 %2143  ;;  %v2133_v45 = vpop.permute.xlu0 %2132  ;;  %v361_v11 = vsel %vm358_vm1, %v359_v4, %v360_v8 }
  0x9d   : > { %v2146_v41 = vunpack.i.h.bf16 %v2144_v38  ;;  %v2145_v43 = vunpack.i.l.bf16 %v2144_v38  ;;  %v2135_v52 = vunpack.i.h.bf16 %v2133_v45  ;;  %v2134_v53 = vunpack.i.l.bf16 %v2133_v45 }
  0x9e   : > { %v1003_v38 = vunpack.c.l.bf16 %v1912_v60  ;;  %v2201_v45 = vunpack.i.l.bf16 %v2200_v37 }
  0x9f   : > { %v326_v57 = vmul.f32 %v2146_v41, %v2638_v56  ;;  %v287_v58 = vmul.f32 %v2145_v43, %v2693_v36  ;;  %v354_v2 = vmul.f32 %v2145_v43, %v2652_v0  ;;  %v257_v3 = vmul.f32 %v2135_v52, %v2712_v47  ;;  %v1877_v41 = vld [vmem:[%s3389_s1 + $0xe] sm:$0x1]  ;;  %v1917_v0 = vld [vmem:[%s3389_s1 + $0x1c] sm:$0x1] }
  0xa0   : > { %v256_v7 = vmul.f32 %v2134_v53, %v2712_v47  ;;  %v413_v56 = vrot.slane %v2771_v33, 3  ;;  %v2202_v43 = vunpack.i.h.bf16 %v2200_v37  ;;  %v691_v37 = vunpack.c.l.bf16 %v1884_v34 }
  0xa1   : > { %v332_v36 = vrot.slane %v326_v57, 1  ;;  %v295_v9 = vrot.slane %v287_v58, 1  ;;  %v259_v23 = vadd.f32 %v257_v3, %v231_v55  ;;  %v362_v47 = vrot.slane %v354_v2, 2  ;;  %v1890_v2 = vld [vmem:[%s3389_s1 + $0x12] sm:$0x1] }
  0xa2   : > { %v258_v22 = vadd.f32 %v256_v7, %v230_v61  ;;  %v1061_v58 = vunpack.c.l.bf16 %v1917_v0  ;;  %v2815_v7 = vperm.slane %v941_v24, 0  ;;  %v2818_v49 = vmul.f32 %v2202_v43, %v2710_v46 }
  0xa3   : > { %v334_v42 = vsel %vm291_vm0, %v332_v36, %v333_v30  ;;  %v296_v33 = vsel %vm291_vm0, %v293_v51, %v295_v9  ;;  %v2215_v55 = vpop.permute.xlu2 %2214  ;;  %v414_v30 = vsel %vm411_vm2, %v412_v10, %v413_v56  ;;  %v641_v51 = vunpack.c.l.bf16 %v1877_v41 }
  0xa4   : > { %v299_v52 = vadd.f32 %v294_v29, %v258_v22  ;;  %v300_v53 = vadd.f32 %v296_v33, %v259_v23  ;;  %v2165_v57 = vpop.permute.xlu1 %2164  ;;  %v2160_v54 = vpop.permute.xlu0 %2159  ;;  %v363_v44 = vsel %vm358_vm1, %v360_v8, %v362_v47  ;;  %v2217_v3 = vunpack.i.h.bf16 %v2215_v55 }
  0xa5   : > { %v2161_v61 = vunpack.i.l.bf16 %v2160_v54  ;;  %v2216_v4 = vunpack.i.l.bf16 %v2215_v55  ;;  %v2821_v10 = vmul.f32 %v2201_v45, %v2710_v46  ;;  %v2166_v9 = vunpack.i.l.bf16 %v2165_v57 }
  0xa6   : > { %v339_v59 = vadd.f32 %v334_v42, %v299_v52  ;;  %v340_v60 = vadd.f32 %v2717_v48, %v300_v53  ;;  %v2823_v48 = vperm.slane %v1003_v38, 0  ;;  %v2162_v22 = vunpack.i.h.bf16 %v2160_v54 }
  0xa7   : > { %v2825_v23 = vperm.slane %v641_v51, 0  ;;  %v767_v41 = vunpack.c.l.bf16 %v1890_v2  ;;  %v407_v8 = vmul.f32 %v2161_v61, %v2654_v1  ;;  %v2828_v42 = vperm.slane %v1061_v58, 0  ;;  %v1894_v2 = vld [vmem:[%s3389_s1 + $0x14] sm:$0x1] }
  0xa8   : > { %v367_v36 = vadd.f32 %v363_v44, %v340_v60  ;;  %v366_v0 = vadd.f32 %v361_v11, %v339_v59  ;;  %v2830_v24 = vperm.slane %v691_v37, 0  ;;  %v750_v47 = vmul.f32 %v2217_v3, %v2740_v14 }
  0xa9   : > { %v2834_v46 = vmul.f32 %v2216_v4, %v2740_v14  ;;  %v2167_v29 = vunpack.i.h.bf16 %v2165_v57  ;;  %v802_v33 = vmul.f32 %v2217_v3, %v2742_v15  ;;  %v2839_v34 = vmul.f32 %v2216_v4, %v2742_v15 }
  0xaa   : > { %v393_v38 = vadd.f32 %v2729_v62, %v367_v36  ;;  %v392_v43 = vadd.f32 %v2745_v16, %v366_v0  ;;  %v415_v1 = vrot.slane %v407_v8, 3  ;;  %v444_v53 = vmul.f32 %v2166_v9, %v2753_v18 }
  0xab   : > { %v2842_v45 = vpop.permute.xlu2 %2229  ;;  %v443_v55 = vmul.f32 %v2162_v22, %v2753_v18  ;;  %v757_v60 = vrot.slane %v750_v47, 1  ;;  %v755_v61 = vrot.slane %v2834_v46, 1  ;;  %v809_v44 = vrot.slane %v802_v33, 2  ;;  %v2861_v22 = vld [vmem:[%s3389_s1 + $0x1e] sm:$0x1] }
  0xac   : > { %v2180_v52 = vpop.permute.xlu1 %2179  ;;  %v2175_v57 = vpop.permute.xlu0 %2174  ;;  %v416_v62 = vsel %vm411_vm2, %v413_v56, %v415_v1  ;;  %v419_v51 = vadd.f32 %v414_v30, %v392_v43  ;;  %v807_v18 = vrot.slane %v2839_v34, 2  ;;  %v2854_v4 = vperm.slane %v767_v41, 0 }
  0xad   : > { %v2182_v11 = vunpack.i.h.bf16 %v2180_v52  ;;  %v2181_v54 = vunpack.i.l.bf16 %v2180_v52  ;;  %v2177_v58 = vunpack.i.h.bf16 %v2175_v57  ;;  %v2176_v59 = vunpack.i.l.bf16 %v2175_v57 }
  0xae   : > { %v420_v16 = vadd.f32 %v416_v62, %v393_v38  ;;  %v445_v56 = vadd.f32 %v443_v55, %v419_v51  ;;  %v469_v0 = vmul.f32 %v2167_v29, %v2662_v5  ;;  %v819_v38 = vunpack.c.l.bf16 %v1894_v2 }
  0xaf   : > { %v539_v37 = vmul.f32 %v2182_v11, %v2683_v26  ;;  %v500_v3 = vmul.f32 %v2177_v58, %v2664_v6  ;;  %v566_v36 = vmul.f32 %v2177_v58, %v2686_v31  ;;  %v499_v9 = vmul.f32 %v2176_v59, %v2664_v6 }
  0xb0   : > { %v446_v30 = vadd.f32 %v444_v53, %v420_v16  ;;  %v538_v8 = vmul.f32 %v2181_v54, %v2683_v26  ;;  %v2868_v41 = vsel %vm291_vm0, %v755_v61, %v757_v60  ;;  %v591_v43 = vmul.f32 %v2182_v11, %v2688_v32  ;;  %v2894_v16 = vld [vmem:[%s3389_s1 + $0x20] sm:$0x1] }
  0xb1   : > { %v507_v47 = vrot.slane %v500_v3, 1  ;;  %v545_v33 = vrot.slane %v539_v37, 1  ;;  %v505_v6 = vrot.slane %v499_v9, 1  ;;  %v2874_v1 = vsel %vm358_vm1, %v807_v18, %v809_v44 }
  0xb2   : > { %v472_v5 = vadd.f32 %v2757_v20, %v446_v30  ;;  %v565_v26 = vmul.f32 %v2176_v59, %v2686_v31  ;;  %v1111_v53 = vunpack.c.l.bf16 %v2861_v22  ;;  %v471_v55 = vadd.f32 %v469_v0, %v445_v56  ;;  %v2888_v20 = vld [vmem:[%s3389_s1 + $0x1f] sm:$0x1] }
  0xb3   : > { %v2245_v29 = vpop.permute.xlu2 %2244  ;;  %v573_v54 = vrot.slane %v566_v36, 2  ;;  %v506_v11 = vsel %vm291_vm0, %v504_v19, %v505_v6  ;;  %v508_v57 = vsel %vm291_vm0, %v505_v6, %v507_v47  ;;  %v2232_v31 = vunpack.i.h.bf16 %v2842_v45 }
  0xb4   : > { %v2878_v52 = vpop.permute.xlu1 %2194  ;;  %v2190_v62 = vpop.permute.xlu0 %2189  ;;  %v544_v51 = vrot.slane %v538_v8, 1  ;;  %v512_v58 = vadd.f32 %v508_v57, %v472_v5  ;;  %v571_v60 = vrot.slane %v565_v26, 2  ;;  %v2231_v63 = vunpack.i.l.bf16 %v2842_v45 }
  0xb5   : > { %v548_v19 = vsel %vm291_vm0, %v545_v33, %v547_v40  ;;  %v597_v37 = vrot.slane %v591_v43, 2  ;;  %v511_v2 = vadd.f32 %v506_v11, %v471_v55  ;;  %v617_v3 = vmul.f32 %v2176_v59, %v2691_v35 }
  0xb6   : > { %v552_v44 = vadd.f32 %v548_v19, %v512_v58  ;;  %v2247_v56 = vunpack.i.h.bf16 %v2245_v29  ;;  %v1151_v30 = vunpack.c.l.bf16 %v2888_v20  ;;  %v574_v36 = vsel %vm358_vm1, %v571_v60, %v573_v54 }
  0xb7   : > { %v2246_v9 = vunpack.i.l.bf16 %v2245_v29  ;;  %v2903_v0 = vperm.slane %v819_v38, 0  ;;  %v1187_v8 = vunpack.c.l.bf16 %v2894_v16  ;;  %v546_v45 = vsel %vm291_vm0, %v544_v51, %v545_v33 }
  0xb8   : > { %v578_v17 = vadd.f32 %v574_v36, %v552_v44  ;;  %v2192_v47 = vunpack.i.h.bf16 %v2190_v62  ;;  %v2191_v40 = vunpack.i.l.bf16 %v2190_v62  ;;  %v2908_v43 = vmul.f32 %v2232_v31, %v2766_v27 }
  0xb9   : > { %v2911_v59 = vmul.f32 %v2231_v63, %v2764_v25  ;;  %v600_v6 = vsel %vm358_vm1, %v597_v37, %v599_v50  ;;  %v551_v5 = vadd.f32 %v546_v45, %v511_v2  ;;  %v623_v38 = vrot.slane %v617_v3, 3 }
  0xba   : > { %v2917_v26 = vmul.f32 %v2247_v56, %v2815_v7  ;;  %v618_v33 = vmul.f32 %v2192_v47, %v2691_v35  ;;  %v590_v29 = vmul.f32 %v2191_v40, %v2688_v32  ;;  %v572_v11 = vsel %vm358_vm1, %v570_v28, %v571_v60 }
  0xbb   : > { %v2921_v55 = vpop.permute.xlu2 %2259  ;;  %v958_v21 = vmul.f32 %v2246_v9, %v2815_v7  ;;  %v2197_v50 = vunpack.i.h.bf16 %v2878_v52  ;;  %v604_v57 = vadd.f32 %v600_v6, %v578_v17  ;;  %v2929_v35 = vmul.f32 %v2247_v56, %v2823_v48 }
  0xbc   : > { %v2210_v54 = vpop.permute.xlu1 %2209  ;;  %v2205_v62 = vpop.permute.xlu0 %2204  ;;  %v625_v31 = vrot.slane %v618_v33, 3  ;;  %v596_v51 = vrot.slane %v590_v29, 2  ;;  %v2196_v32 = vunpack.i.l.bf16 %v2878_v52  ;;  %v577_v19 = vadd.f32 %v572_v11, %v551_v5 }
  0xbd   : > { %v2211_v58 = vunpack.i.l.bf16 %v2210_v54  ;;  %v2207_v63 = vunpack.i.h.bf16 %v2205_v62  ;;  %v2212_v2 = vunpack.i.h.bf16 %v2210_v54  ;;  %v2206_v44 = vunpack.i.l.bf16 %v2205_v62 }
  0xbe   : > { %v598_v13 = vsel %vm358_vm1, %v596_v51, %v597_v37  ;;  %v626_v28 = vsel %vm411_vm2, %v623_v38, %v625_v31  ;;  %v654_v3 = vmul.f32 %v2197_v50, %v2825_v23  ;;  %v624_v56 = vsel %vm411_vm2, %v622_v39, %v623_v38 }
  0xbf   : > { %v710_v60 = vmul.f32 %v2211_v58, %v2830_v24  ;;  %v603_v36 = vadd.f32 %v598_v13, %v577_v19  ;;  %v630_v9 = vadd.f32 %v626_v28, %v604_v57  ;;  %v709_v45 = vmul.f32 %v2207_v63, %v2830_v24 }
  0xc0   : > { %v965_v52 = vrot.slane %v2917_v26, 1  ;;  %v964_v17 = vrot.slane %v958_v21, 1  ;;  %v653_v37 = vmul.f32 %v2196_v32, %v2825_v23  ;;  %v2262_v33 = vunpack.i.h.bf16 %v2921_v55 }
  0xc1   : > { %v717_v47 = vrot.slane %v710_v60, 1  ;;  %v629_v40 = vadd.f32 %v624_v56, %v603_v36  ;;  %v656_v6 = vadd.f32 %v654_v3, %v630_v9  ;;  %v715_v5 = vrot.slane %v709_v45, 1 }
  0xc2   : > { %v748_v29 = vmul.f32 %v2212_v2, %v2740_v14  ;;  %v776_v54 = vmul.f32 %v2211_v58, %v2854_v4  ;;  %v708_v11 = vmul.f32 %v2206_v44, %v2830_v24  ;;  %v775_v21 = vmul.f32 %v2207_v63, %v2854_v4 }
  0xc3   : > { %v2275_v12 = vpop.permute.xlu2 %2274  ;;  %v682_v39 = vadd.f32 %v2818_v49, %v656_v6  ;;  %v718_v38 = vsel %vm291_vm0, %v715_v5, %v717_v47  ;;  %v655_v23 = vadd.f32 %v653_v37, %v629_v40  ;;  %v1017_v62 = vrot.slane %v2929_v35, 2  ;;  %v1904_v37 = vld [vmem:[%s3389_s1 + $0x17] sm:$0x1] }
  0xc4   : > { %v2225_v50 = vpop.permute.xlu1 %2224  ;;  %v2220_v57 = vpop.permute.xlu0 %2219  ;;  %v2953_v14 = vsel %vm291_vm0, %v964_v17, %v965_v52  ;;  %v714_v31 = vrot.slane %v708_v11, 1  ;;  %v2957_v24 = vperm.slane %v1111_v53, 0  ;;  %v2261_v49 = vunpack.i.l.bf16 %v2921_v55 }
  0xc5   : > { %v681_v51 = vadd.f32 %v2821_v10, %v655_v23  ;;  %v722_v58 = vadd.f32 %v718_v38, %v682_v39  ;;  %v2226_v32 = vunpack.i.l.bf16 %v2225_v50  ;;  %v2962_v19 = vmul.f32 %v2262_v33, %v2828_v42  ;;  %v1914_v23 = vld [vmem:[%s3389_s1 + $0x1b] sm:$0x1] }
  0xc6   : > { %v754_v2 = vrot.slane %v748_v29, 1  ;;  %v716_v13 = vsel %vm291_vm0, %v714_v31, %v715_v5  ;;  %v2967_v28 = vperm.slane %v1151_v30, 0  ;;  %v783_v60 = vrot.slane %v776_v54, 2 }
  0xc7   : > { %v781_v22 = vrot.slane %v775_v21, 2  ;;  %v827_v53 = vmul.f32 %v2207_v63, %v2903_v0  ;;  %v2277_v44 = vunpack.i.h.bf16 %v2275_v12  ;;  %v2276_v55 = vunpack.i.l.bf16 %v2275_v12 }
  0xc8   : > { %v828_v10 = vmul.f32 %v2226_v32, %v2903_v0  ;;  %v2222_v3 = vunpack.i.h.bf16 %v2220_v57  ;;  %v2221_v36 = vunpack.i.l.bf16 %v2220_v57  ;;  %v2972_v9 = vmul.f32 %v2261_v49, %v2828_v42 }
  0xc9   : > { %v721_v45 = vadd.f32 %v716_v13, %v681_v51  ;;  %v762_v56 = vadd.f32 %v2868_v41, %v722_v58  ;;  %v2977_v20 = vperm.slane %v1187_v8, 0  ;;  %v2227_v30 = vunpack.i.h.bf16 %v2225_v50  ;;  %v1937_v51 = vld [vmem:[%s3389_s1 + $0x23] sm:$0x1] }
  0xca   : > { %v800_v17 = vmul.f32 %v2222_v3, %v2742_v15  ;;  %v774_v63 = vmul.f32 %v2221_v36, %v2854_v4  ;;  %v826_v47 = vmul.f32 %v2221_v36, %v2903_v0  ;;  %v756_v41 = vsel %vm291_vm0, %v754_v2, %v755_v61  ;;  %v1910_v4 = vld [vmem:[%s3389_s1 + $0x19] sm:$0x1]  ;;  %v1934_v61 = vld [vmem:[%s3389_s1 + $0x22] sm:$0x1] }
  0xcb   : > { %v784_v16 = vsel %vm358_vm1, %v781_v22, %v783_v60  ;;  %v833_v8 = vrot.slane %v827_v53, 3  ;;  %v2990_v40 = vmul.f32 %v2277_v44, %v2967_v28  ;;  %v2992_v15 = vpop.permute.xlu2 %2289  ;;  %v2998_v6 = vmul.f32 %v2276_v55, %v2957_v24 }
  0xcc   : > { %v2240_v42 = vpop.permute.xlu1 %2239  ;;  %v2235_v0 = vpop.permute.xlu0 %2234  ;;  %v835_v5 = vrot.slane %v828_v10, 3  ;;  %v806_v46 = vrot.slane %v800_v17, 2  ;;  %v780_v33 = vrot.slane %v774_v63, 2  ;;  %v788_v29 = vadd.f32 %v784_v16, %v762_v56 }
  0xcd   : > { %v3004_v54 = vmul.f32 %v2276_v55, %v2977_v20  ;;  %v761_v11 = vadd.f32 %v756_v41, %v721_v45  ;;  %v901_v12 = vunpack.c.l.bf16 %v1904_v37  ;;  %v863_v50 = vmul.f32 %v2227_v30, %v2764_v25  ;;  %v1944_v55 = vld [vmem:[%s3389_s1 + $0x25] sm:$0x1]  ;;  %v1950_v41 = vld [vmem:[%s3389_s1 + $0x27] sm:$0x1] }
  0xce   : > { %v782_v39 = vsel %vm358_vm1, %v780_v33, %v781_v22  ;;  %v832_v38 = vrot.slane %v826_v47, 3  ;;  %v977_v21 = vunpack.c.l.bf16 %v1910_v4  ;;  %v1174_v57 = vrot.slane %v2990_v40, 1 }
  0xcf   : > { %v787_v31 = vadd.f32 %v782_v39, %v761_v11  ;;  %v1239_v49 = vunpack.c.l.bf16 %v1934_v61  ;;  %v917_v58 = vperm.slane %v901_v12, 0  ;;  %v836_v32 = vsel %vm411_vm2, %v833_v8, %v835_v5 }
  0xd0   : > { %v808_v25 = vsel %vm358_vm1, %v806_v46, %v807_v18  ;;  %v2242_v2 = vunpack.i.h.bf16 %v2240_v42  ;;  %v2241_v13 = vunpack.i.l.bf16 %v2240_v42  ;;  %v1029_v22 = vunpack.c.l.bf16 %v1914_v23 }
  0xd1   : > { %v813_v60 = vadd.f32 %v808_v25, %v787_v31  ;;  %v2237_v53 = vunpack.i.h.bf16 %v2235_v0  ;;  %v814_v44 = vadd.f32 %v2874_v1, %v788_v29  ;;  %v1137_v10 = vrot.slane %v2998_v6, 1 }
  0xd2   : > { %v834_v3 = vsel %vm411_vm2, %v832_v38, %v833_v8  ;;  %v1271_v36 = vunpack.c.l.bf16 %v1937_v51  ;;  %v983_v45 = vperm.slane %v977_v21, 0  ;;  %v920_v18 = vmul.f32 %v2242_v2, %v917_v58 }
  0xd3   : > { %v839_v56 = vadd.f32 %v834_v3, %v813_v60  ;;  %v2236_v30 = vunpack.i.l.bf16 %v2235_v0  ;;  %v840_v17 = vadd.f32 %v836_v32, %v814_v44  ;;  %v1203_v47 = vrot.slane %v3004_v54, 2  ;;  %v1954_v0 = vld [vmem:[%s3389_s1 + $0x29] sm:$0x1]  ;;  %v2305_v46 = vpop.permute.xlu2 %2304 }
  0xd4   : > { %v2255_v34 = vpop.permute.xlu1 %2254  ;;  %v3025_v63 = vpop.permute.xlu0 %2249  ;;  %v3028_v1 = vperm.slane %v1239_v49, 0  ;;  %v919_v37 = vmul.f32 %v2241_v13, %v917_v58  ;;  %v1321_v42 = vunpack.c.l.bf16 %v1944_v55  ;;  %v2292_v16 = vunpack.i.h.bf16 %v2992_v15 }
  0xd5   : > { %v2291_v8 = vunpack.i.l.bf16 %v2992_v15  ;;  %v1035_v4 = vperm.slane %v1029_v22, 0  ;;  %v918_v5 = vmul.f32 %v2237_v53, %v917_v58  ;;  %v865_v33 = vadd.f32 %v863_v50, %v839_v56 }
  0xd6   : > { %v3038_v61 = vperm.slane %v1271_v36, 0  ;;  %v986_v29 = vmul.f32 %v2242_v2, %v983_v45  ;;  %v985_v11 = vmul.f32 %v2241_v13, %v983_v45  ;;  %v927_v12 = vrot.slane %v920_v18, 1 }
  0xd7   : > { %v866_v39 = vadd.f32 %v2911_v59, %v840_v17  ;;  %v890_v38 = vmul.f32 %v2236_v30, %v2766_v27  ;;  %v1397_v21 = vunpack.c.l.bf16 %v1950_v41  ;;  %v925_v23 = vrot.slane %v919_v37, 1 }
  0xd8   : > { %v3042_v15 = vperm.slane %v1321_v42, 0  ;;  %v1449_v31 = vunpack.c.l.bf16 %v1954_v0  ;;  %v2307_v49 = vunpack.i.h.bf16 %v2305_v46  ;;  %v3045_v51 = vmul.f32 %v2291_v8, %v3028_v1 }
  0xd9   : > { %v3047_v58 = vmul.f32 %v2241_v13, %v1035_v4  ;;  %v924_v50 = vrot.slane %v918_v5, 1  ;;  %v2306_v32 = vunpack.i.l.bf16 %v2305_v46  ;;  %v993_v25 = vrot.slane %v986_v29, 2 }
  0xda   : > { %v991_v2 = vrot.slane %v985_v11, 2  ;;  %v891_v60 = vadd.f32 %v2908_v43, %v865_v33  ;;  %v2257_v59 = vunpack.i.h.bf16 %v2255_v34  ;;  %v3053_v27 = vmul.f32 %v2292_v16, %v3038_v61  ;;  %v1952_v33 = vld [vmem:[%s3389_s1 + $0x28] sm:$0x1] }
  0xdb   : > { %v892_v53 = vadd.f32 %v890_v38, %v866_v39  ;;  %v3055_v44 = vperm.slane %v1397_v21, 0  ;;  %v2256_v55 = vunpack.i.l.bf16 %v2255_v34  ;;  %v928_v13 = vsel %vm291_vm0, %v925_v23, %v927_v12 }
  0xdc   : > { %v3050_v22 = vpop.permute.xlu1 %2269  ;;  %v3057_v3 = vpop.permute.xlu0 %2264  ;;  %v3060_v36 = vperm.slane %v1449_v31, 0  ;;  %v1340_v56 = vmul.f32 %v2307_v49, %v3042_v15  ;;  %v2252_v43 = vunpack.i.h.bf16 %v3025_v63  ;;  %v1255_v18 = vrot.slane %v3045_v51, 3 }
  0xdd   : > { %v1043_v30 = vrot.slane %v3047_v58, 3  ;;  %v926_v17 = vsel %vm291_vm0, %v924_v50, %v925_v23  ;;  %v3068_v37 = vmul.f32 %v2306_v32, %v3042_v15  ;;  %v994_v34 = vsel %vm358_vm1, %v991_v2, %v993_v25 }
  0xde   : > { %v931_v42 = vadd.f32 %v926_v17, %v891_v60  ;;  %v1038_v41 = vmul.f32 %v2257_v59, %v1035_v4  ;;  %v984_v16 = vmul.f32 %v2252_v43, %v983_v45  ;;  %v932_v8 = vadd.f32 %v928_v13, %v892_v53  ;;  %v2320_v45 = vpop.permute.xlu2 %2319  ;;  %v1920_v17 = vld [vmem:[%s3389_s1 + $0x1d] sm:$0x1] }
  0xdf   : > { %v1406_v5 = vmul.f32 %v2307_v49, %v3055_v44  ;;  %v1010_v0 = vmul.f32 %v2256_v55, %v2823_v48  ;;  %v2251_v46 = vunpack.i.l.bf16 %v3025_v63  ;;  %v1347_v29 = vrot.slane %v1340_v56, 1 }
  0xe0   : > { %v3078_v11 = vmul.f32 %v2306_v32, %v3055_v44  ;;  %v3081_v12 = vmul.f32 %v2306_v32, %v3060_v36  ;;  %v990_v39 = vrot.slane %v984_v16, 2  ;;  %v1345_v38 = vrot.slane %v3068_v37, 1 }
  0xe1   : > { %v1036_v21 = vmul.f32 %v2252_v43, %v1035_v4  ;;  %v960_v23 = vmul.f32 %v2251_v46, %v2815_v7  ;;  %v1012_v63 = vmul.f32 %v2251_v46, %v2823_v48  ;;  %v1045_v31 = vrot.slane %v1038_v41, 3 }
  0xe2   : > { %v992_v49 = vsel %vm358_vm1, %v990_v39, %v991_v2  ;;  %v971_v58 = vadd.f32 %v2953_v14, %v931_v42  ;;  %v1423_v50 = vunpack.c.l.bf16 %v1952_v33  ;;  %v1016_v60 = vrot.slane %v1010_v0, 2  ;;  %v1964_v0 = vld [vmem:[%s3389_s1 + $0x2c] sm:$0x1] }
  0xe3   : > { %v967_v32 = vrot.slane %v960_v23, 1  ;;  %v2322_v59 = vunpack.i.h.bf16 %v2320_v45  ;;  %v2272_v53 = vunpack.i.h.bf16 %v3050_v22  ;;  %v1413_v4 = vrot.slane %v1406_v5, 2 }
  0xe4   : > { %v3088_v25 = vpop.permute.xlu1 %2284  ;;  %v3091_v55 = vpop.permute.xlu0 %2279  ;;  %v1411_v7 = vrot.slane %v3078_v11, 2  ;;  %v1463_v48 = vrot.slane %v3081_v12, 3  ;;  %v997_v13 = vadd.f32 %v992_v49, %v971_v58  ;;  %v3098_v14 = vsel %vm291_vm0, %v1345_v38, %v1347_v29  ;;  %v1932_v49 = vld [vmem:[%s3389_s1 + $0x21] sm:$0x1] }
  0xe5   : > { %v1042_v2 = vrot.slane %v1036_v21, 3  ;;  %v968_v56 = vsel %vm291_vm0, %v965_v52, %v967_v32  ;;  %v1019_v43 = vrot.slane %v1012_v63, 2  ;;  %v3106_v41 = vperm.slane %v1423_v50, 0 }
  0xe6   : > { %v972_v42 = vadd.f32 %v968_v56, %v932_v8  ;;  %v2321_v16 = vunpack.i.l.bf16 %v2320_v45  ;;  %v2271_v5 = vunpack.i.l.bf16 %v3050_v22  ;;  %v1018_v26 = vsel %vm358_vm1, %v1016_v60, %v1017_v62  ;;  %v2335_v60 = vpop.permute.xlu2 %2334 }
  0xe7   : > { %v3116_v52 = vmul.f32 %v2322_v59, %v3060_v36  ;;  %v1129_v46 = vmul.f32 %v2272_v53, %v2957_v24  ;;  %v3120_v8 = vmul.f32 %v2272_v53, %v2977_v20  ;;  %v1046_v33 = vsel %vm411_vm2, %v1043_v30, %v1045_v31 }
  0xe8   : > { %v998_v29 = vadd.f32 %v994_v34, %v972_v42  ;;  %v1087_v22 = vunpack.c.l.bf16 %v1920_v17  ;;  %v1023_v39 = vadd.f32 %v1018_v26, %v997_v13  ;;  %v3126_v45 = vsel %vm358_vm1, %v1411_v7, %v1413_v4 }
  0xe9   : > { %v1044_v21 = vsel %vm411_vm2, %v1042_v2, %v1043_v30  ;;  %v1020_v23 = vsel %vm358_vm1, %v1017_v62, %v1019_v43  ;;  %v1531_v63 = vunpack.c.l.bf16 %v1964_v0  ;;  %v3136_v34 = vmul.f32 %v2321_v16, %v3106_v41  ;;  %v1970_v30 = vld [vmem:[%s3389_s1 + $0x2e] sm:$0x1] }
  0xea   : > { %v1024_v31 = vadd.f32 %v1020_v23, %v998_v29  ;;  %v1128_v58 = vmul.f32 %v2271_v5, %v2957_v24  ;;  %v1049_v50 = vadd.f32 %v1044_v21, %v1023_v39  ;;  %v1465_v62 = vrot.slane %v3116_v52, 3 }
  0xeb   : > { %v1135_v32 = vrot.slane %v1129_v46, 1  ;;  %v1201_v59 = vrot.slane %v3120_v8, 2  ;;  %v3147_v4 = vmul.f32 %v2272_v53, %v3028_v1  ;;  %v1098_v2 = vperm.slane %v1087_v22, 0 }
  0xec   : > { %v3142_v35 = vpop.permute.xlu1 %2299  ;;  %v3149_v13 = vpop.permute.xlu0 %2294  ;;  %v2266_v24 = vunpack.i.l.bf16 %v3057_v3  ;;  %v1050_v56 = vadd.f32 %v1046_v33, %v1024_v31  ;;  %v1213_v43 = vunpack.c.l.bf16 %v1932_v49  ;;  %v2267_v17 = vunpack.i.h.bf16 %v3057_v3 }
  0xed   : > { %v3153_v42 = vperm.slane %v1531_v63, 0  ;;  %v1607_v16 = vunpack.c.l.bf16 %v1970_v30  ;;  %v2337_v5 = vunpack.i.h.bf16 %v2335_v60  ;;  %v1436_v0 = vrot.slane %v3136_v34, 2 }
  0xee   : > { %v1134_v26 = vrot.slane %v1128_v58, 1  ;;  %v1075_v46 = vadd.f32 %v2972_v9, %v1049_v50  ;;  %v2286_v53 = vunpack.i.l.bf16 %v3088_v25  ;;  %v1253_v29 = vrot.slane %v3147_v4, 3 }
  0xef   : > { %v1076_v22 = vadd.f32 %v2962_v19, %v1050_v56  ;;  %v1219_v39 = vperm.slane %v1213_v43, 0  ;;  %v2287_v33 = vunpack.i.h.bf16 %v3088_v25  ;;  %v3166_v3 = vsel %vm358_vm1, %v1201_v59, %v1203_v47 }
  0xf0   : > { %v1138_v9 = vsel %vm291_vm0, %v1135_v32, %v1137_v10  ;;  %v1099_v21 = vmul.f32 %v2266_v24, %v1098_v2  ;;  %v3171_v23 = vunpack.i.l.bf16 %v2335_v60  ;;  %v1100_v63 = vmul.f32 %v2267_v17, %v1098_v2  ;;  %v1972_v60 = vld [vmem:[%s3389_s1 + $0x2f] sm:$0x1] }
  0xf1   : > { %v3173_v49 = vperm.slane %v1607_v16, 0  ;;  %v3176_v19 = vmul.f32 %v2337_v5, %v3153_v42  ;;  %v2282_v54 = vunpack.i.h.bf16 %v3091_v55  ;;  %v1136_v25 = vsel %vm291_vm0, %v1134_v26, %v1135_v32  ;;  %v1940_v26 = vld [vmem:[%s3389_s1 + $0x24] sm:$0x1] }
  0xf2   : > { %v1101_v31 = vadd.f32 %v1099_v21, %v1075_v46  ;;  %v1194_v47 = vmul.f32 %v2286_v53, %v2977_v20  ;;  %v2281_v6 = vunpack.i.l.bf16 %v3091_v55  ;;  %v1102_v58 = vadd.f32 %v1100_v63, %v1076_v22 }
  0xf3   : > { %v1220_v10 = vmul.f32 %v2287_v33, %v1219_v39  ;;  %v1246_v50 = vmul.f32 %v2286_v53, %v3028_v1  ;;  %v1170_v30 = vmul.f32 %v2282_v54, %v2967_v28  ;;  %v3191_v32 = vmul.f32 %v3171_v23, %v3153_v42  ;;  %v3214_v1 = vpop.permute.xlu2 %2349 }
  0xf4   : > { %v3187_v2 = vpop.permute.xlu0 %2309  ;;  %v1222_v24 = vmul.f32 %v2282_v54, %v1219_v39  ;;  %v1169_v20 = vmul.f32 %v2281_v6, %v2967_v28  ;;  %v1221_v55 = vmul.f32 %v2281_v6, %v1219_v39  ;;  %v3194_v56 = vpop.permute.xlu1 %2314  ;;  %v3198_v43 = vmul.f32 %v2337_v5, %v3173_v49 }
  0xf5   : > { %v3202_v17 = vmul.f32 %v3171_v23, %v3173_v49  ;;  %v1177_v16 = vrot.slane %v1170_v30, 1  ;;  %v1141_v46 = vadd.f32 %v1136_v25, %v1101_v31  ;;  %v1200_v53 = vrot.slane %v1194_v47, 2  ;;  %v1974_v30 = vld [vmem:[%s3389_s1 + $0x30] sm:$0x1] }
  0xf6   : > { %v1175_v28 = vrot.slane %v1169_v20, 1  ;;  %v1633_v22 = vunpack.c.l.bf16 %v1972_v60  ;;  %v1142_v39 = vadd.f32 %v1138_v9, %v1102_v58  ;;  %v1226_v33 = vrot.slane %v1220_v10, 2 }
  0xf7   : > { %v1252_v21 = vrot.slane %v1246_v50, 3  ;;  %v1229_v63 = vrot.slane %v1222_v24, 2  ;;  %v1227_v6 = vrot.slane %v1221_v55, 2  ;;  %v1297_v25 = vunpack.c.l.bf16 %v1940_v26 }
  0xf8   : > { %v1176_v5 = vsel %vm291_vm0, %v1174_v57, %v1175_v28  ;;  %v1178_v54 = vsel %vm291_vm0, %v1175_v28, %v1177_v16  ;;  %v1555_v31 = vrot.slane %v3191_v32, 1  ;;  %v2302_v58 = vunpack.i.h.bf16 %v3142_v35  ;;  %v1948_v16 = vld [vmem:[%s3389_s1 + $0x26] sm:$0x1] }
  0xf9   : > { %v1181_v9 = vadd.f32 %v1176_v5, %v1141_v46  ;;  %v1182_v47 = vadd.f32 %v1178_v54, %v1142_v39  ;;  %v1623_v40 = vrot.slane %v3198_v43, 2  ;;  %v1621_v57 = vrot.slane %v3202_v17, 2 }
  0xfa   : > { %v1202_v10 = vsel %vm358_vm1, %v1200_v53, %v1201_v59  ;;  %v3223_v50 = vperm.slane %v1633_v22, 0  ;;  %v1254_v60 = vsel %vm411_vm2, %v1252_v21, %v1253_v29  ;;  %v1659_v20 = vunpack.c.l.bf16 %v1974_v30 }
  0xfb   : > { %v1207_v24 = vadd.f32 %v1202_v10, %v1181_v9  ;;  %v2351_v55 = vunpack.i.l.bf16 %v3214_v1  ;;  %v1228_v26 = vsel %vm358_vm1, %v1226_v33, %v1227_v6  ;;  %v1230_v8 = vsel %vm358_vm1, %v1227_v6, %v1229_v63 }
  0xfc   : > { %v1308_v46 = vperm.slane %v1297_v25, 0  ;;  %v2297_v59 = vunpack.i.h.bf16 %v3149_v13  ;;  %v3235_v53 = vpop.permute.xlu0 %2324  ;;  %v1338_v22 = vmul.f32 %v2302_v58, %v3042_v15  ;;  %v2296_v39 = vunpack.i.l.bf16 %v3149_v13  ;;  %v3247_v6 = vpop.permute.xlu1 %2329 }
  0xfd   : > { %v1233_v28 = vadd.f32 %v1228_v26, %v1207_v24  ;;  %v1208_v21 = vadd.f32 %v3166_v3, %v1182_v47  ;;  %v2301_v5 = vunpack.i.l.bf16 %v3142_v35  ;;  %v1256_v33 = vsel %vm411_vm2, %v1253_v29, %v1255_v18 }
  0xfe   : > { %v1361_v63 = vunpack.c.l.bf16 %v1948_v16  ;;  %v2317_v54 = vunpack.i.h.bf16 %v3194_v56  ;;  %v2316_v15 = vunpack.i.l.bf16 %v3194_v56  ;;  %v2312_v13 = vunpack.i.h.bf16 %v3187_v2 }
  0xff   : > { %v1234_v30 = vadd.f32 %v1230_v8, %v1208_v21  ;;  %v1259_v25 = vadd.f32 %v1254_v60, %v1233_v28  ;;  %v1309_v3 = vmul.f32 %v2297_v59, %v1308_v46  ;;  %v2311_v51 = vunpack.i.l.bf16 %v3187_v2 }
 0x100   : > { %v1377_v9 = vperm.slane %v1361_v63, 0  ;;  %v1404_v35 = vmul.f32 %v2317_v54, %v3055_v44  ;;  %v1284_v18 = vmul.f32 %v2296_v39, %v3038_v61  ;;  %v1431_v47 = vmul.f32 %v2312_v13, %v3106_v41 }
 0x101   : > { %v1260_v4 = vadd.f32 %v1256_v33, %v1234_v30  ;;  %v1285_v29 = vadd.f32 %v3053_v27, %v1259_v25  ;;  %v1344_v58 = vrot.slane %v1338_v22, 1  ;;  %v1310_v10 = vmul.f32 %v2301_v5, %v1308_v46  ;;  %v1957_v46 = vld [vmem:[%s3389_s1 + $0x2a] sm:$0x1] }
 0x102   : > { %v1380_v60 = vmul.f32 %v2316_v15, %v1377_v9  ;;  %v1379_v24 = vmul.f32 %v2312_v13, %v1377_v9  ;;  %v1456_v26 = vmul.f32 %v2317_v54, %v3060_v36  ;;  %v1432_v8 = vmul.f32 %v2316_v15, %v3106_v41 }
 0x103   : > { %v1286_v56 = vadd.f32 %v1284_v18, %v1260_v4  ;;  %v1311_v16 = vadd.f32 %v1309_v3, %v1285_v29  ;;  %v1410_v44 = vrot.slane %v1404_v35, 2  ;;  %v1378_v28 = vmul.f32 %v2311_v51, %v1377_v9 }
 0x104   : > { %v1387_v59 = vrot.slane %v1380_v60, 1  ;;  %v1385_v2 = vrot.slane %v1379_v24, 1  ;;  %v3258_v21 = vperm.slane %v1659_v20, 0  ;;  %v2352_v61 = vunpack.i.h.bf16 %v3214_v1  ;;  %v1960_v20 = vld [vmem:[%s3389_s1 + $0x2b] sm:$0x1]  ;;  %v2340_v33 = vpop.permute.xlu0 %2339  ;;  %v2345_v9 = vpop.permute.xlu1 %2344 }
 0x105   : > { %v1312_v27 = vadd.f32 %v1310_v10, %v1286_v56  ;;  %v1437_v39 = vrot.slane %v1431_v47, 2  ;;  %v1346_v36 = vsel %vm291_vm0, %v1344_v58, %v1345_v38  ;;  %v1384_v22 = vrot.slane %v1378_v28, 1  ;;  %v1968_v38 = vld [vmem:[%s3389_s1 + $0x2d] sm:$0x1] }
 0x106   : > { %v1388_v41 = vsel %vm291_vm0, %v1385_v2, %v1387_v59  ;;  %v2332_v5 = vunpack.i.h.bf16 %v3247_v6  ;;  %v3275_v63 = vmul.f32 %v2351_v55, %v3173_v49  ;;  %v1351_v54 = vadd.f32 %v1346_v36, %v1311_v16 }
 0x107   : > { %v1352_v37 = vadd.f32 %v3098_v14, %v1312_v27  ;;  %v1462_v30 = vrot.slane %v1456_v26, 3  ;;  %v1412_v25 = vsel %vm358_vm1, %v1410_v44, %v1411_v7  ;;  %v1439_v15 = vrot.slane %v1432_v8, 2 }
 0x108   : > { %v1386_v13 = vsel %vm291_vm0, %v1384_v22, %v1385_v2  ;;  %v1481_v3 = vunpack.c.l.bf16 %v1957_v46  ;;  %v1438_v49 = vsel %vm358_vm1, %v1436_v0, %v1437_v39  ;;  %v1507_v51 = vunpack.c.l.bf16 %v1960_v20 }
 0x109   : > { %v1391_v35 = vadd.f32 %v1386_v13, %v1351_v54  ;;  %v1392_v14 = vadd.f32 %v1388_v41, %v1352_v37  ;;  %v1548_v4 = vmul.f32 %v2332_v5, %v3153_v42  ;;  %v2326_v29 = vunpack.i.l.bf16 %v3235_v53 }
 0x10a   : > { %v1492_v18 = vperm.slane %v1481_v3, 0  ;;  %v1571_v11 = vunpack.c.l.bf16 %v1968_v38  ;;  %v2347_v58 = vunpack.i.h.bf16 %v2345_v9  ;;  %v2346_v10 = vunpack.i.l.bf16 %v2345_v9 }
 0x10b   : > { %v1417_v47 = vadd.f32 %v1412_v25, %v1391_v35  ;;  %v1418_v7 = vadd.f32 %v3126_v45, %v1392_v14  ;;  %v1440_v60 = vsel %vm358_vm1, %v1437_v39, %v1439_v15  ;;  %v2331_v34 = vunpack.i.l.bf16 %v3247_v6 }
 0x10c   : > { %v2327_v0 = vunpack.i.h.bf16 %v3235_v53  ;;  %v1587_v24 = vperm.slane %v1571_v11, 0  ;;  %v1518_v56 = vperm.slane %v1507_v51, 0  ;;  %v1464_v42 = vsel %vm411_vm2, %v1462_v30, %v1463_v48  ;;  %v1663_v41 = vpop.permute.xlu0 %1662 }
 0x10d   : > { %v1443_v16 = vadd.f32 %v1438_v49, %v1417_v47  ;;  %v1444_v26 = vadd.f32 %v1440_v60, %v1418_v7  ;;  %v1466_v45 = vsel %vm411_vm2, %v1463_v48, %v1465_v62  ;;  %v2342_v59 = vunpack.i.h.bf16 %v2340_v33 }
 0x10e   : > { %v1590_v8 = vmul.f32 %v2347_v58, %v1587_v24  ;;  %v1589_v44 = vmul.f32 %v2346_v10, %v1587_v24  ;;  %v1554_v6 = vrot.slane %v1548_v4, 1  ;;  %v1493_v28 = vmul.f32 %v2326_v29, %v1492_v18 }
 0x10f   : > { %v1469_v2 = vadd.f32 %v1464_v42, %v1443_v16  ;;  %v1470_v53 = vadd.f32 %v1466_v45, %v1444_v26  ;;  %v1494_v27 = vmul.f32 %v2327_v0, %v1492_v18  ;;  %v1588_v46 = vmul.f32 %v2342_v59, %v1587_v24 }
 0x110   : > { %v1595_v39 = vrot.slane %v1589_v44, 1  ;;  %v2341_v36 = vunpack.i.l.bf16 %v2340_v33  ;;  %v1640_v22 = vmul.f32 %v2352_v61, %v3223_v50  ;;  %v1519_v20 = vmul.f32 %v2331_v34, %v1518_v56 }
 0x111   : > { %v1495_v52 = vadd.f32 %v1493_v28, %v1469_v2  ;;  %v1597_v5 = vrot.slane %v1590_v8, 1  ;;  %v1496_v12 = vadd.f32 %v1494_v27, %v1470_v53  ;;  %v1641_v48 = vmul.f32 %v2346_v10, %v3223_v50 }
 0x112   : > { %v1594_v62 = vrot.slane %v1588_v46, 1  ;;  %v1520_v54 = vmul.f32 %v2341_v36, %v1518_v56  ;;  %v1666_v37 = vmul.f32 %v2351_v55, %v3258_v21  ;;  %v1642_v38 = vmul.f32 %v2347_v58, %v3223_v50  ;;  %v2353_v58 = vld [vmem:[%s3390_s2] ss:$0 sm:$0xff] }
 0x113   : > { %v1521_v30 = vadd.f32 %v1519_v20, %v1495_v52  ;;  %v1668_v33 = vmul.f32 %v3258_v21, %v1663_v41  ;;  %v1620_v61 = vrot.slane %v3275_v63, 2  ;;  %v1556_v25 = vsel %vm291_vm0, %v1554_v6, %v1555_v31 }
 0x114   : > { %v1596_v15 = vsel %vm291_vm0, %v1594_v62, %v1595_v39  ;;  %v1522_v13 = vadd.f32 %v1520_v54, %v1496_v12  ;;  %v1598_v1 = vsel %vm291_vm0, %v1595_v39, %v1597_v5  ;;  %v3395_v55 = vrot.slane %v3176_v19, 1 }
 0x115   : > { %v1561_v3 = vadd.f32 %v1556_v25, %v1521_v30  ;;  %v1667_v63 = vmul.f32 %v3171_v23, %v3258_v21  ;;  %v1647_v9 = vrot.slane %v1641_v48, 2  ;;  %v1649_v35 = vrot.slane %v1642_v38, 2 }
 0x116   : > { %v1558_v50 = vsel %vm291_vm0, %v1555_v31, %v3395_v55  ;;  %v1675_v51 = vrot.slane %v1668_v33, 3  ;;  %v1646_v4 = vrot.slane %v1640_v22, 2  ;;  %v1622_v19 = vsel %vm358_vm1, %v1620_v61, %v1621_v57 }
 0x117   : > { %v1562_v49 = vadd.f32 %v1558_v50, %v1522_v13  ;;  %v1601_v14 = vadd.f32 %v1596_v15, %v1561_v3  ;;  %v1672_v32 = vrot.slane %v1666_v37, 3  ;;  %v1624_v23 = vsel %vm358_vm1, %v1621_v57, %v1623_v40  ;;  %v2354_v40 = vld [vmem:[%s3391_s3] ss:$0 sm:$0xff] }
 0x118   : > { %v1673_v21 = vrot.slane %v1667_v63, 3  ;;  %v1648_v29 = vsel %vm358_vm1, %v1646_v4, %v1647_v9  ;;  %v1650_v47 = vsel %vm358_vm1, %v1647_v9, %v1649_v35 }
 0x119   : > { %v1602_v18 = vadd.f32 %v1598_v1, %v1562_v49  ;;  %v1627_v31 = vadd.f32 %v1622_v19, %v1601_v14 }
 0x11a   : > { %v1676_v43 = vsel %vm411_vm2, %v1673_v21, %v1675_v51  ;;  %v1674_v17 = vsel %vm411_vm2, %v1672_v32, %v1673_v21 }
 0x11b   : > { %v1628_v11 = vadd.f32 %v1624_v23, %v1602_v18  ;;  %v1653_v7 = vadd.f32 %v1648_v29, %v1627_v31 }
 0x11d   : > { %v1654_v10 = vadd.f32 %v1650_v47, %v1628_v11  ;;  %v1679_v57 = vadd.f32 %v1674_v17, %v1653_v7 }
 0x11f   : > { %v1680_v60 = vadd.f32 %v1676_v43, %v1654_v10  ;;  %v1685_v34 = vmul.f32 %v2353_v58, %v1679_v57 }
 0x121   : > { %v1686_v0 = vmul.f32 %v2353_v58, %v1680_v60  ;;  %v1691_v24 = vadd.f32 %v2354_v40, %v1685_v34 }
 0x123   : > { %v1692_v56 = vadd.f32 %v2354_v40, %v1686_v0  ;;  %v1693_v42 = vmax.f32 %v1691_v24, 0.0 }
 0x125   : > { %v1694_v16 = vmax.f32 %v1692_v56, 0.0  ;;  %v1695_v26 = vpack.c.bf16 %v1693_v42, %v1693_v42 }
 0x127   : > { %v1696_v45 = vpack.c.bf16 %v1694_v16, %v1694_v16  ;;  %1698 = vst.msk [vmem:[%s204_s9] sm:$0xf] %vm1697_vm3, %v1695_v26 }
 0x129   : > { %1699 = vst.msk [vmem:[%s204_s9 + $0x4] sm:$0xf] %vm1697_vm3, %v1696_v45 }
 0x12a   : > { %2382 = shalt.err (!%p2379_p6)
}
 0x12b   : > { %s2452_s12 = smov 64   ;;  %s2453_s5 = smov 4  }
 0x12c   : > { %2051 = dma.vmem_to_hbm [thread:$0]  (%p2530_p3), %s1716_s14, 128, %s1718_s10, %s1701_s11, %s2452_s12, %s2452_s12, %s2453_s5  }
 0x12d PF: > { %p2057_p7 = scmp.ge.s32.totalorder %s2449_s22, 2  ;;  %s1732_s6 = sand.u32 1, %s2421_s15  }
 0x12e   : > { %s1733_s8 = scalar_lea.sflag [#allocation3], %s1732_s6 }
 0x12f   : > { %p2054_p9 = pnand %p2057_p7, %p2539_p8 }
 0x131   : > { %p2055_p10 = pneg %p2054_p9 }
 0x133   : > { %2416 = dma.done.wait (%p2055_p10), %s1733_s8, 128  }
 0x134   : > { %2418 = vsyncadd (%p2055_p10), %s1733_s8, 4294967168  ;;  %s17_s22 = sadd.s32 1, %s2449_s22   ;;  %s3396_s15 = smov %s2425_s16 }
 0x135   : > { %p14_p11 = scmp.ge.s32.totalorder %s17_s22, 34   ;;  %s3397_s16 = smov %s2429_s17 }
 0x136   : > { %s3398_s17 = smov %s2548_s7  ;;  %s3399_s18 = smov %s2441_s20 }
 0x137   : > { %s3400_s19 = smov %s2445_s21  ;;  %s3401_s20 = smov %s3404_s25 }
 0x138   : > { %s3402_s21 = smov %s3408_s26  ;;  %16 = sbr.rel (!%p14_p11) target bundleno = 5 (0x5), region = 133 }
 0x13d   :  { %1739 = vsyncpa [#allocation3], 1 }
 0x13e   :  { %1741 = vsyncpa [#allocation3 + $0x1], 1 }

</bundles_post_ra>
